<compile_context>
chip_gen: v7x
topology: tpu7x:2x2x1
jax: 0.10.0
libtpu: 0.0.40
codegen_flags: <defaults>
</compile_context>

<pallas_src>
import functools
import math

import jax
import jax.numpy as jnp
from jax import lax
from jax.experimental import pallas as pl
from jax.experimental.pallas import tpu as pltpu


_TM_CAP = 8192     # max sample rows per grid block
_CHUNK = 256       # lane-chunk width inside the kernel (multiple of 128)
_LANE = 128


def _cdiv(a, b):
    return -(-a // b)


def _round_up(a, m):
    return _cdiv(a, m) * m


def _choose_row_tile(M, cap=_TM_CAP, lane=_LANE):
    """Sample-row tile: multiple of 128, big, and (for large M) an even number
    of near-equal blocks so v7x's two TensorCores get balanced work."""
    m_pad = _round_up(M, lane)
    if m_pad <= 1024:
        return m_pad                                   # single small block
    n_blocks = max(2, 2 * _cdiv(m_pad, 2 * cap))       # even block count
    return min(cap, _round_up(_cdiv(M, n_blocks), lane))


def _multires_fcseq_kernel(x_ref, *refs, n_layers, chunk):
    """Lane-dense chunked MLP.

    x_ref:   (TM, F)  natural sample-major tile (no HBM transpose needed).
    refs:    (w1T, b1, w2T, b2, ..., wLT, bL, out_ref)
             wiT: (out_i, in_i), bi: (out_i, 1), out_ref: (TM, out_dim).

    Per `chunk`-row slice: the feature axes are contracted with a
    transposed-RHS dot_general so activations become lane-dense
    (out_i, chunk); sin() and the hidden matmuls run full-lane; the small
    (out_dim, chunk) result is transposed back (XLU) for the natural-layout
    store.  Chunking keeps live activations within the vreg file (no spills).
    """
    out_ref = refs[-1]
    wb = refs[:-1]
    ws = [wb[2 * l][...] for l in range(n_layers)]       # hoisted, tiny
    bs = [wb[2 * l + 1][...] for l in range(n_layers)]   # (out_i, 1)

    tm = x_ref.shape[0]
    nt_dims = (((1,), (1,)), ((), ()))                   # contract feature axes

    for start in range(0, tm, chunk):
        ch = min(chunk, tm - start)
        x_c = x_ref[start:start + ch, :]                 # (ch, F)

        # Layer 1 absorbs x's transpose: (out1, F) . (ch, F)^T -> (out1, ch).
        h = lax.dot_general(ws[0], x_c, nt_dims,
                            preferred_element_type=jnp.float32) + bs[0]
        for layer in range(1, n_layers):
            h = jnp.sin(h)                               # act between layers only
            h = jnp.dot(ws[layer], h,
                        preferred_element_type=jnp.float32) + bs[layer]

        # Back to sample-major for the natural-layout HBM writeback.
        out_ref[start:start + ch, :] = jnp.transpose(h).astype(out_ref.dtype)


def multires_fcseq_pallas(x, weights, biases, multires):
    """x: (..., F).  weights[i]: (in_i, out_i) (transposed nn.Linear layout).
    biases[i]: (out_i,).  Returns (..., out_dim)."""
    orig_shape = x.shape
    F = orig_shape[-1]
    M = math.prod(orig_shape[:-1])

    n_layers = len(weights)
    out_dim = weights[-1].shape[1]
    n_res = len(multires)

    # Fold multires scale + concat into the first weight (trace-time, free).
    w1 = weights[0]
    assert w1.shape[0] == n_res * F, (w1.shape, n_res, F)
    w1_eff = sum(float(s) * w1[j * F:(j + 1) * F, :] for j, s in enumerate(multires))
    eff_weights = [w1_eff] + list(weights[1:])

    wts = [w.T for w in eff_weights]                     # (out_i, in_i)
    bs = [b.reshape(-1, 1) for b in biases]              # (out_i, 1)

    x2 = x.reshape(M, F)                                 # natural layout, no .T

    TM = _choose_row_tile(M)
    CH = min(_CHUNK, TM)

    # Tiny-input guard: if the single block would exceed the whole array,
    # pad the (small) input so block <= array.  Only triggers for M <= ~1024.
    M_run = M
    if TM > M:
        x2 = jnp.pad(x2, ((0, TM - M), (0, 0)))
        M_run = TM

    n_blocks = _cdiv(M_run, TM)

    kernel = functools.partial(_multires_fcseq_kernel,
                               n_layers=n_layers, chunk=CH)

    in_specs = [pl.BlockSpec((TM, F), lambda i: (i, 0))]
    args = [x2]
    for wt, b in zip(wts, bs):
        # Resident parameters: constant block index => no re-DMA across steps.
        # (pipeline_mode=pl.Buffered(1) would drop the redundant second buffer;
        #  skipped here as a negligible-VMEM cleanup.)
        in_specs.append(pl.BlockSpec(wt.shape, lambda i: (0, 0)))
        in_specs.append(pl.BlockSpec(b.shape, lambda i: (0, 0)))
        args.extend([wt, b])

    out = pl.pallas_call(
        kernel,
        out_shape=jax.ShapeDtypeStruct((M_run, out_dim), x.dtype),
        grid_spec=pltpu.PrefetchScalarGridSpec(
            num_scalar_prefetch=0,
            grid=(n_blocks,),
            in_specs=in_specs,
            out_specs=pl.BlockSpec((TM, out_dim), lambda i: (i, 0)),
        ),
        compiler_params=pltpu.CompilerParams(
            dimension_semantics=("parallel",),
        ),
    )(*args)

    if M_run != M:
        out = out[:M]
    return out.reshape(*orig_shape[:-1], out_dim)


def multires_fcseq_reference(x, weights, biases, multires):
    """Pure-JAX reference matching the PyTorch forward exactly (un-folded)."""
    xs = jnp.concatenate([s * x for s in multires], axis=-1)
    h = xs
    for i, (w, b) in enumerate(zip(weights, biases)):
        h = h @ w + b
        if i != len(weights) - 1:
            h = jnp.sin(h)
    return h


def init_params(key, neurons, multires):
    """Deterministic init.  FCSeq sees [len(multires)*neurons[0]] + neurons[1:]."""
    dims = [len(multires) * neurons[0]] + list(neurons[1:])
    weights, biases = [], []
    for i in range(len(dims) - 1):
        key, kw, kb = jax.random.split(key, 3)
        fan_in = dims[i]
        bound = 1.0 / (fan_in ** 0.5)  # same scale as torch.nn.Linear default
        w = jax.random.uniform(kw, (dims[i], dims[i + 1]),
                               minval=-bound, maxval=bound, dtype=jnp.float32)
        b = jax.random.uniform(kb, (dims[i + 1],),
                               minval=-bound, maxval=bound, dtype=jnp.float32)
        weights.append(w)   # stored as (in, out) == transposed PyTorch layout
        biases.append(b)
    return weights, biases


if __name__ == "__main__":
    key = jax.random.PRNGKey(0)

    neurons = [8, 32, 32, 16]          # per-sample feature dim + FCSeq dims
    multires = (1, 4, 16)

    key, kp = jax.random.split(key)
    weights, biases = init_params(kp, neurons, multires)

    # --- small, module-consistent shapes (exercises the tiny-M pad path) ---
    key, kx = jax.random.split(key)
    x_small = jax.random.normal(kx, (2, 8, neurons[0]), dtype=jnp.float32)
    y_small = jax.block_until_ready(
        multires_fcseq_pallas(x_small, weights, biases, multires))
    y_small_ref = multires_fcseq_reference(x_small, weights, biases, multires)
    assert y_small.shape == (2, 8, neurons[-1]), y_small.shape
    assert jnp.allclose(y_small, y_small_ref, atol=2e-4, rtol=2e-4), (
        float(jnp.max(jnp.abs(y_small - y_small_ref))))

    # --- larger ragged case: M = 2176 -> 2 near-equal blocks of 1152 rows,
    #     last block partial (tests the M % TM != 0 masked writeback). ---
    key, kx2 = jax.random.split(key)
    x_big = jax.random.normal(kx2, (17, 128, neurons[0]), dtype=jnp.float32)
    y_big = jax.block_until_ready(
        multires_fcseq_pallas(x_big, weights, biases, multires))
    y_big_ref = multires_fcseq_reference(x_big, weights, biases, multires)
    assert y_big.shape == (17, 128, neurons[-1]), y_big.shape
    assert jnp.allclose(y_big, y_big_ref, atol=2e-4, rtol=2e-4), (
        float(jnp.max(jnp.abs(y_big - y_big_ref))))

    print("KERNEL_OK")
</pallas_src>

<mosaic_0001>
module attributes {stable_mosaic.version = 11 : i64} {
  func.func @_multires_fcseq_kernel(%arg0: i32, %arg1: memref<128x8xf32, #tpu.memory_space<vmem>>, %arg2: memref<32x8xf32, #tpu.memory_space<vmem>>, %arg3: memref<32x1xf32, #tpu.memory_space<vmem>>, %arg4: memref<32x32xf32, #tpu.memory_space<vmem>>, %arg5: memref<32x1xf32, #tpu.memory_space<vmem>>, %arg6: memref<16x32xf32, #tpu.memory_space<vmem>>, %arg7: memref<16x1xf32, #tpu.memory_space<vmem>>, %arg8: memref<128x16xf32, #tpu.memory_space<vmem>>) attributes {dimension_semantics = [#tpu.dimension_semantics<parallel>], iteration_bounds = array<i64: 1>, scalar_prefetch = 0 : i64, scratch_operands = 0 : i64, tpu.core_type = #tpu.core_type<tc>, window_params = [{transform_indices = @transform_0, window_bounds = array<i64: 128, 8>}, {pipeline_mode = #tpu.pipeline_mode<synchronous>, transform_indices = @transform_1, window_bounds = array<i64: 32, 8>}, {pipeline_mode = #tpu.pipeline_mode<synchronous>, transform_indices = @transform_2, window_bounds = array<i64: 32, 1>}, {pipeline_mode = #tpu.pipeline_mode<synchronous>, transform_indices = @transform_3, window_bounds = array<i64: 32, 32>}, {pipeline_mode = #tpu.pipeline_mode<synchronous>, transform_indices = @transform_4, window_bounds = array<i64: 32, 1>}, {pipeline_mode = #tpu.pipeline_mode<synchronous>, transform_indices = @transform_5, window_bounds = array<i64: 16, 32>}, {pipeline_mode = #tpu.pipeline_mode<synchronous>, transform_indices = @transform_6, window_bounds = array<i64: 16, 1>}, {transform_indices = @transform_7, window_bounds = array<i64: 128, 16>}]} {
    %c0 = arith.constant 0 : index
    %c0_0 = arith.constant 0 : index
    %0 = vector.load %arg2[%c0, %c0_0] : memref<32x8xf32, #tpu.memory_space<vmem>>, vector<32x8xf32>
    %c0_1 = arith.constant 0 : index
    %c0_2 = arith.constant 0 : index
    %1 = vector.load %arg4[%c0_1, %c0_2] : memref<32x32xf32, #tpu.memory_space<vmem>>, vector<32x32xf32>
    %c0_3 = arith.constant 0 : index
    %c0_4 = arith.constant 0 : index
    %2 = vector.load %arg6[%c0_3, %c0_4] : memref<16x32xf32, #tpu.memory_space<vmem>>, vector<16x32xf32>
    %c0_5 = arith.constant 0 : index
    %c0_6 = arith.constant 0 : index
    %3 = vector.load %arg3[%c0_5, %c0_6] : memref<32x1xf32, #tpu.memory_space<vmem>>, vector<32x1xf32>
    %c0_7 = arith.constant 0 : index
    %c0_8 = arith.constant 0 : index
    %4 = vector.load %arg5[%c0_7, %c0_8] : memref<32x1xf32, #tpu.memory_space<vmem>>, vector<32x1xf32>
    %c0_9 = arith.constant 0 : index
    %c0_10 = arith.constant 0 : index
    %5 = vector.load %arg7[%c0_9, %c0_10] : memref<16x1xf32, #tpu.memory_space<vmem>>, vector<16x1xf32>
    %c0_11 = arith.constant 0 : index
    %c0_12 = arith.constant 0 : index
    %6 = vector.load %arg1[%c0_11, %c0_12] : memref<128x8xf32, #tpu.memory_space<vmem>>, vector<128x8xf32>
    %cst = arith.constant dense<0.000000e+00> : vector<32x128xf32>
    %7 = tpu.matmul %0, %6, %cst {dimension_numbers = #tpu.dot_dimension_numbers<[1], [1], [0], [0], [0, 0, 1, 0], [], []>} : vector<32x8xf32>, vector<128x8xf32>, vector<32x128xf32> -> vector<32x128xf32>
    %8 = vector.broadcast %3 : vector<32x1xf32> to vector<32x128xf32>
    %9 = arith.addf %7, %8 : vector<32x128xf32>
    %10 = math.sin %9 : vector<32x128xf32>
    %cst_13 = arith.constant dense<0.000000e+00> : vector<32x128xf32>
    %11 = tpu.matmul %1, %10, %cst_13 {dimension_numbers = #tpu.dot_dimension_numbers<[1], [0], [0], [1], [0, 0, 1, 1], [], []>} : vector<32x32xf32>, vector<32x128xf32>, vector<32x128xf32> -> vector<32x128xf32>
    %12 = vector.broadcast %4 : vector<32x1xf32> to vector<32x128xf32>
    %13 = arith.addf %11, %12 : vector<32x128xf32>
    %14 = math.sin %13 : vector<32x128xf32>
    %cst_14 = arith.constant dense<0.000000e+00> : vector<16x128xf32>
    %15 = tpu.matmul %2, %14, %cst_14 {dimension_numbers = #tpu.dot_dimension_numbers<[1], [0], [0], [1], [0, 0, 1, 1], [], []>} : vector<16x32xf32>, vector<32x128xf32>, vector<16x128xf32> -> vector<16x128xf32>
    %16 = vector.broadcast %5 : vector<16x1xf32> to vector<16x128xf32>
    %17 = arith.addf %15, %16 : vector<16x128xf32>
    %18 = tpu.transpose %17, [1, 0] : vector<16x128xf32> -> vector<128x16xf32>
    %c0_15 = arith.constant 0 : index
    %c0_16 = arith.constant 0 : index
    %19 = vector.load %arg8[%c0_15, %c0_16] : memref<128x16xf32, #tpu.memory_space<vmem>>, vector<128x16xf32>
    tpu.vector_store %arg8[%c0_15, %c0_16], %18 {strides = array<i32>} : memref<128x16xf32, #tpu.memory_space<vmem>>, vector<128x16xf32>,
    return
  }
  func.func @transform_0(%arg0: i32) -> (i32, i32) {
    %c0_i32 = arith.constant 0 : i32
    %c0_i32_0 = arith.constant 0 : i32
    return %arg0, %c0_i32 : i32, i32
  }
  func.func @transform_1(%arg0: i32) -> (i32, i32) {
    %c0_i32 = arith.constant 0 : i32
    %c0_i32_0 = arith.constant 0 : i32
    %c0_i32_1 = arith.constant 0 : i32
    return %c0_i32, %c0_i32_0 : i32, i32
  }
  func.func @transform_2(%arg0: i32) -> (i32, i32) {
    %c0_i32 = arith.constant 0 : i32
    %c0_i32_0 = arith.constant 0 : i32
    %c0_i32_1 = arith.constant 0 : i32
    return %c0_i32, %c0_i32_0 : i32, i32
  }
  func.func @transform_3(%arg0: i32) -> (i32, i32) {
    %c0_i32 = arith.constant 0 : i32
    %c0_i32_0 = arith.constant 0 : i32
    %c0_i32_1 = arith.constant 0 : i32
    return %c0_i32, %c0_i32_0 : i32, i32
  }
  func.func @transform_4(%arg0: i32) -> (i32, i32) {
    %c0_i32 = arith.constant 0 : i32
    %c0_i32_0 = arith.constant 0 : i32
    %c0_i32_1 = arith.constant 0 : i32
    return %c0_i32, %c0_i32_0 : i32, i32
  }
  func.func @transform_5(%arg0: i32) -> (i32, i32) {
    %c0_i32 = arith.constant 0 : i32
    %c0_i32_0 = arith.constant 0 : i32
    %c0_i32_1 = arith.constant 0 : i32
    return %c0_i32, %c0_i32_0 : i32, i32
  }
  func.func @transform_6(%arg0: i32) -> (i32, i32) {
    %c0_i32 = arith.constant 0 : i32
    %c0_i32_0 = arith.constant 0 : i32
    %c0_i32_1 = arith.constant 0 : i32
    return %c0_i32, %c0_i32_0 : i32, i32
  }
  func.func @transform_7(%arg0: i32) -> (i32, i32) {
    %c0_i32 = arith.constant 0 : i32
    %c0_i32_0 = arith.constant 0 : i32
    return %arg0, %c0_i32 : i32, i32
  }
}

</mosaic_0001>

<bundles_post_ra>
// kernel: tpu_custom_call.1
= control target key start
LH: loop header
LB: loop body
LE: loop exit
PB: predicated region body
PF: predicated region fallthrough
CT: control target
= control target key end

     0   :  { %vm82_vm0 = vcmask 64512   ;;  %v1615_v3 = vmov 0   ;;  %vm664_vm14 = vcmask 261120   ;;  %s2470_s0 = inlined_call_operand.vmem [shape: f32[128,8], index: 0, kind: input, shape index: {}]   ;;  %s2471_s1 = inlined_call_operand.vmem [shape: f32[32,8], index: 1, kind: input, shape index: {}]   ;;  %s2472_s2 = inlined_call_operand.vmem [shape: f32[32,1], index: 2, kind: input, shape index: {}]   ;;  %s2473_s4 = inlined_call_operand.vmem [shape: f32[32,1], index: 4, kind: input, shape index: {}]   ;;  %s2474_s6 = inlined_call_operand.vmem [shape: f32[16,1], index: 6, kind: input, shape index: {}]   ;;  %s2475_s3 = inlined_call_operand.vmem [shape: f32[32,32], index: 3, kind: input, shape index: {}]   ;;  %s2476_s5 = inlined_call_operand.vmem [shape: f32[16,32], index: 5, kind: input, shape index: {}]   ;;  %s2477_s7 = inlined_call_operand.vmem [shape: f32[128,16], index: 7, kind: output, shape index: {}]  }
   0x1   :  { %v46_v0 = vld [vmem:[%s2470_s0] sm:$0xff]  ;;  %v47_v1 = vld [vmem:[%s2470_s0 + $0x8] sm:$0xff]  ;;  %vm1670_vm1 = vmpackc.low %vm82_vm0, %vm82_vm0  ;;  %1581 = vset.pattern.permute.xlu0 %v1615_v3  ;;  %1582 = vset.pattern.permute.xlu1 %v1615_v3 }
   0x2   :  { %v1477_v4 = vpack.c.bf16 %v47_v1, %v46_v0  ;;  %v48_v5 = vld [vmem:[%s2470_s0 + $0x10] sm:$0xff]  ;;  %v49_v6 = vld [vmem:[%s2470_s0 + $0x18] sm:$0xff]  ;;  %v26_v8 = vld [vmem:[%s2471_s1] sm:$0xff] }
   0x3   :  { %v1483_v7 = vpack.c.bf16 %v49_v6, %v48_v5  ;;  %v50_v9 = vld [vmem:[%s2470_s0 + $0x20] sm:$0xff]  ;;  %v51_v10 = vld [vmem:[%s2470_s0 + $0x28] sm:$0xff]  ;;  %1446 = vmatprep.mubr.msk.f32.mxu0 %vm82_vm0, %v26_v8  ;;  %v38_v12 = vld [vmem:[%s2472_s2 + $0x10] sm:$0xff] }
   0x4   :  { %1479 = vmatprep.subr.msk.bf16.mxu0 %vm1670_vm1, %v1477_v4  ;;  %v36_v11 = vld [vmem:[%s2472_s2] sm:$0xff]  ;;  %74 = vperm.xlu1 %1582, %v38_v12   ;;  %v1489_v13 = vpack.c.bf16 %v51_v10, %v50_v9  ;;  %v37_v14 = vld [vmem:[%s2472_s2 + $0x8] sm:$0xff]  ;;  %v39_v15 = vld [vmem:[%s2472_s2 + $0x18] sm:$0xff] }
   0x5   :  { %1482 = vmatpush3.bf16.xpose.msk.msra.mxu0 %vm1670_vm1, %v1477_v4  ;;  %64 = vperm.xlu0 %1581, %v36_v11   ;;  %v40_v16 = vld [vmem:[%s2473_s4] sm:$0xff]  ;;  %v52_v17 = vld [vmem:[%s2470_s0 + $0x30] sm:$0xff]  ;;  %v53_v18 = vld [vmem:[%s2470_s0 + $0x38] sm:$0xff] }
   0x6   :  { %1485 = vmatprep.subr.msk.bf16.mxu0 %vm1670_vm1, %v1483_v7  ;;  %v41_v19 = vld [vmem:[%s2473_s4 + $0x8] sm:$0xff]  ;;  %v1495_v20 = vpack.c.bf16 %v53_v18, %v52_v17  ;;  %v42_v21 = vld [vmem:[%s2473_s4 + $0x10] sm:$0xff]  ;;  %v43_v22 = vld [vmem:[%s2473_s4 + $0x18] sm:$0xff] }
   0x7   :  { %v44_v23 = vld [vmem:[%s2474_s6] sm:$0xff]  ;;  %v55_v25 = vld [vmem:[%s2470_s0 + $0x48] sm:$0xff]  ;;  %v56_v28 = vld [vmem:[%s2470_s0 + $0x50] sm:$0xff] }
   0x8   :  { %79 = vperm.xlu1 %1582, %v39_v15   ;;  %v54_v24 = vld [vmem:[%s2470_s0 + $0x40] sm:$0xff]  ;;  %v45_v26 = vld [vmem:[%s2474_s6 + $0x8] sm:$0xff]  ;;  %v57_v29 = vld [vmem:[%s2470_s0 + $0x58] sm:$0xff] }
   0x9   :  { %69 = vperm.xlu0 %1581, %v37_v14   ;;  %v1501_v27 = vpack.c.bf16 %v55_v25, %v54_v24  ;;  %v1507_v30 = vpack.c.bf16 %v57_v29, %v56_v28  ;;  %v58_v31 = vld [vmem:[%s2470_s0 + $0x60] sm:$0xff]  ;;  %v59_v32 = vld [vmem:[%s2470_s0 + $0x68] sm:$0xff]  ;;  %v60_v34 = vld [vmem:[%s2470_s0 + $0x70] sm:$0xff]  ;;  %v1618_v24 = vmov 2131351028  }
   0xa   :  { %v1513_v33 = vpack.c.bf16 %v59_v32, %v58_v31  ;;  %v61_v35 = vld [vmem:[%s2470_s0 + $0x78] sm:$0xff]  ;;  %v27_v37 = vld [vmem:[%s2471_s1 + $0x8] sm:$0xff]  ;;  %v28_v38 = vld [vmem:[%s2471_s1 + $0x10] sm:$0xff]  ;;  %v1620_v28 = vmov 920167782  }
   0xb   :  { %v1519_v36 = vpack.c.bf16 %v61_v35, %v60_v34  ;;  %v29_v39 = vld [vmem:[%s2471_s1 + $0x18] sm:$0xff]  ;;  %v1621_v35 = vmov 1326507024  }
   0xc   :  { %651 = vperm.xlu1 %1582, %v41_v19   ;;  %v1616_v19 = vmov 683565275  }
   0xd   :  { %1488 = vmatpush3.bf16.xpose.msk.msra.mxu0 %vm1670_vm1, %v1483_v7  ;;  %646 = vperm.xlu0 %1581, %v40_v16  }
   0xe   :  { %1491 = vmatprep.subr.msk.bf16.mxu0 %vm1670_vm1, %v1489_v13 }
  0x10   :  { %661 = vperm.xlu1 %1582, %v43_v22  }
  0x11   :  { %656 = vperm.xlu0 %1581, %v42_v21   ;;  %v1617_v21 = vmov 2475754826  }
  0x14   :  { %1185 = vperm.xlu1 %1582, %v45_v26   ;;  %v1619_v26 = vmov 2102212464  }
  0x15   :  { %1494 = vmatpush3.bf16.xpose.msk.msra.mxu0 %vm1670_vm1, %v1489_v13  ;;  %1180 = vperm.xlu0 %1581, %v44_v23  }
  0x16   :  { %1497 = vmatprep.subr.msk.bf16.mxu0 %vm1670_vm1, %v1495_v20 }
  0x1d   :  { %1500 = vmatpush3.bf16.xpose.msk.msra.mxu0 %vm1670_vm1, %v1495_v20 }
  0x1e   :  { %1503 = vmatprep.subr.msk.bf16.mxu0 %vm1670_vm1, %v1501_v27 }
  0x25   :  { %1506 = vmatpush3.bf16.xpose.msk.msra.mxu0 %vm1670_vm1, %v1501_v27 }
  0x26   :  { %1509 = vmatprep.subr.msk.bf16.mxu0 %vm1670_vm1, %v1507_v30 }
  0x2d   :  { %1512 = vmatpush3.bf16.xpose.msk.msra.mxu0 %vm1670_vm1, %v1507_v30 }
  0x2e   :  { %1515 = vmatprep.subr.msk.bf16.mxu0 %vm1670_vm1, %v1513_v33 }
  0x35   :  { %1518 = vmatpush3.bf16.xpose.msk.msra.mxu0 %vm1670_vm1, %v1513_v33 }
  0x36   :  { %1521 = vmatprep.subr.msk.bf16.mxu0 %vm1670_vm1, %v1519_v36 }
  0x3d   :  { %1524 = vmatpush3.bf16.xpose.msk.msra.mxu0 %vm1670_vm1, %v1519_v36 }
  0x44   :  { %1447 = vmatmul.mubr.msk.f32.vlgmr.msra.gmra.mrb[0].mxu0 %vm82_vm0, %v27_v37 }
  0x45   :  { %1449 = vmatprep.mubr.msk.f32.mxu0 %vm82_vm0, %v28_v38 }
  0x48   :  { %1450 = vmatmul.mubr.msk.f32.gmra.mrb[2].mxu0 %vm82_vm0, %v29_v39 }
  0x83   :  { %v75_v41 = vpop.permute.xlu1 %74 }
  0x84   :  { %v65_v40 = vpop.permute.xlu0 %64 }
  0x87   :  { %v80_v49 = vpop.permute.xlu1 %79 }
  0x88   :  { %v70_v42 = vpop.permute.xlu0 %69 }
 0x117   :  { %v1448_v43 = vpop.f32.mrb[0].mxu0 }
 0x118   :  { %v1794_v44 = vadd.f32 %v1448_v43, %v70_v42  ;;  %v209_v45 = vpop.f32.mrb[1].mxu0 }
 0x119   :  { %v1796_v46 = vadd.f32 %v209_v45, %v65_v40 }
 0x11a   :  { %v332_v47 = vand.u32 2147483647, %v1794_v44  ;;  %v335_v48 = vand.u32 2139095040, %v1794_v44 }
 0x11b   :  { %v228_v50 = vand.u32 2147483647, %v1796_v46  ;;  %v231_v51 = vand.u32 2139095040, %v1796_v46  ;;  %v1451_v52 = vpop.f32.mrb[2].mxu0 }
 0x11c   :  { %v336_v53 = vshrl.u32 %v335_v48, 23  ;;  %v339_v54 = vand.u32 8388607, %v332_v47  ;;  %v1804_v55 = vadd.f32 %v1451_v52, %v80_v49  ;;  %v219_v56 = vpop.f32.mrb[3].mxu0 }
 0x11d   :  { %v232_v57 = vshrl.u32 %v231_v51, 23  ;;  %v235_v58 = vand.u32 8388607, %v228_v50  ;;  %v1809_v61 = vadd.f32 %v219_v56, %v75_v41 }
 0x11e   :  { %v1346_v59 = vadd.s32 4294967169, %v336_v53  ;;  %v540_v60 = vand.u32 2147483647, %v1804_v55  ;;  %v340_v62 = vor.u32 8388608, %v339_v54  ;;  %v543_v0 = vand.u32 2139095040, %v1804_v55 }
 0x11f   :  { %v1342_v63 = vadd.s32 4294967169, %v232_v57  ;;  %v236_v2 = vor.u32 8388608, %v235_v58  ;;  %v436_v6 = vand.u32 2147483647, %v1809_v61  ;;  %v439_v17 = vand.u32 2139095040, %v1809_v61 }
 0x120   :  { %v342_v1 = vadd.s32 1, %v1346_v59  ;;  %v544_v4 = vshrl.u32 %v543_v0, 23  ;;  %v1814_v5 = vand.u32 8388607, %v540_v60  ;;  %v1817_v8 = vshll.u32 %v340_v62, 8 }
 0x121   :  { %v238_v3 = vadd.s32 1, %v1342_v63  ;;  %v1819_v13 = vshll.u32 %v236_v2, 8 }
 0x122   :  { %vm343_vm2 = vcmp.gt.s32.totalorder %v342_v1, 0  ;;  %v1354_v9 = vadd.s32 4294967169, %v544_v4  ;;  %v548_v16 = vor.u32 8388608, %v1814_v5 }
 0x123   :  { %v344_v7 = vsel %vm343_vm2, %v342_v1, 0  ;;  %vm239_vm3 = vcmp.gt.s32.totalorder %v238_v3, 0 }
 0x124   :  { %v345_v10 = vshrl.u32 %v344_v7, 5  ;;  %v346_v11 = vand.u32 31, %v344_v7  ;;  %v240_v12 = vsel %vm239_vm3, %v238_v3, 0  ;;  %v1827_v23 = vadd.s32 1, %v1354_v9 }
 0x125   :  { %v1821_v14 = vshrl.u32 %v240_v12, 5  ;;  %v242_v15 = vand.u32 31, %v240_v12 }
 0x126   :  { %v347_v18 = vsub.s32 32, %v346_v11  ;;  %v349_v20 = vshll.u32 %v1616_v19, %v346_v11  ;;  %v352_v22 = vshll.u32 %v1617_v21, %v346_v11  ;;  %v355_v25 = vshll.u32 %v1618_v24, %v346_v11 }
 0x127   :  { %v358_v27 = vshll.u32 %v1619_v26, %v346_v11  ;;  %v361_v29 = vshll.u32 %v1620_v28, %v346_v11  ;;  %vm364_vm4 = vcmp.lt.s32.totalorder %v345_v10, 1  ;;  %vm365_vm5 = vcmp.lt.s32.totalorder %v345_v10, 2 }
 0x128   :  { %v350_v30 = vshrl.u32 %v1617_v21, %v347_v18  ;;  %v353_v31 = vshrl.u32 %v1618_v24, %v347_v18  ;;  %v356_v32 = vshrl.u32 %v1619_v26, %v347_v18  ;;  %v348_v33 = vshrl.u32 %v1616_v19, %v347_v18 }
 0x129   :  { %v359_v34 = vshrl.u32 %v1620_v28, %v347_v18  ;;  %v362_v36 = vshrl.u32 %v1621_v35, %v347_v18  ;;  %vm366_vm6 = vcmp.lt.s32.totalorder %v345_v10, 3  ;;  %v243_v40 = vsub.s32 32, %v242_v15 }
 0x12a   :  { %v351_v37 = vor.u32 %v350_v30, %v349_v20  ;;  %v354_v38 = vor.u32 %v353_v31, %v352_v22  ;;  %v357_v39 = vor.u32 %v356_v32, %v355_v25  ;;  %vm367_vm7 = vcmp.lt.s32.totalorder %v345_v10, 4 }
 0x12b   :  { %v360_v41 = vor.u32 %v359_v34, %v358_v27  ;;  %v363_v42 = vor.u32 %v362_v36, %v361_v29  ;;  %v245_v43 = vshll.u32 %v1616_v19, %v242_v15  ;;  %v248_v56 = vshll.u32 %v1617_v21, %v242_v15 }
 0x12c   :  { %v368_v45 = vsel %vm364_vm4, %v348_v33, %v351_v37  ;;  %v369_v48 = vsel %vm367_vm7, %v357_v39, 2102212464  ;;  %v372_v49 = vsel %vm364_vm4, %v351_v37, %v354_v38  ;;  %v376_v51 = vsel %vm364_vm4, %v354_v38, %v357_v39 }
 0x12d   :  { %v370_v52 = vsel %vm366_vm6, %v354_v38, %v369_v48  ;;  %v373_v53 = vsel %vm367_vm7, %v360_v41, 920167782  ;;  %v377_v54 = vsel %vm367_vm7, %v363_v42, 1326507024  ;;  %v244_v59 = vshrl.u32 %v1616_v19, %v243_v40 }
 0x12e   :  { %v374_v57 = vsel %vm366_vm6, %v357_v39, %v373_v53  ;;  %v378_v58 = vsel %vm366_vm6, %v360_v41, %v377_v54  ;;  %v246_v62 = vshrl.u32 %v1617_v21, %v243_v40  ;;  %v371_v63 = vsel %vm365_vm5, %v368_v45, %v370_v52 }
 0x12f   :  { %v375_v0 = vsel %vm365_vm5, %v372_v49, %v374_v57  ;;  %v379_v1 = vsel %vm365_vm5, %v376_v51, %v378_v58  ;;  %v249_v2 = vshrl.u32 %v1618_v24, %v243_v40  ;;  %v251_v18 = vshll.u32 %v1618_v24, %v242_v15 }
 0x130   :  { %v1853_v3 = vmul.u32.u64.low %v1817_v8, %v379_v1  ;;  %v1854_v4 = vmul.u32.u64.high %v1817_v8, %v379_v1, %v1853_v3  ;;  %v1857_v7 = vmul.u32.u64.low %v1817_v8, %v375_v0  ;;  %v1858_v9 = vmul.u32.u64.high %v1817_v8, %v375_v0, %v1857_v7 }
 0x131   :  { %v247_v11 = vor.u32 %v246_v62, %v245_v43  ;;  %v250_v12 = vor.u32 %v249_v2, %v248_v56  ;;  %v252_v20 = vshrl.u32 %v1619_v26, %v243_v40  ;;  %v387_v10 = vmul.u32 %v1817_v8, %v371_v63 }
 0x132   :  { %v254_v22 = vshll.u32 %v1619_v26, %v242_v15  ;;  %v255_v25 = vshrl.u32 %v1620_v28, %v243_v40  ;;  %v258_v27 = vshrl.u32 %v1621_v35, %v243_v40  ;;  %v257_v30 = vshll.u32 %v1620_v28, %v242_v15 }
 0x133   :  { %v253_v29 = vor.u32 %v252_v20, %v251_v18  ;;  %vm260_vm8 = vcmp.lt.s32.totalorder %v1821_v14, 1  ;;  %vm261_vm9 = vcmp.lt.s32.totalorder %v1821_v14, 2  ;;  %vm389_vm10 = vc.u32 %v1854_v4, %v1857_v7 }
 0x134   :  { %v390_v31 = vadd.s32 1, %v1858_v9  ;;  %v256_v32 = vor.u32 %v255_v25, %v254_v22  ;;  %vm262_vm11 = vcmp.lt.s32.totalorder %v1821_v14, 3  ;;  %v259_v8 = vor.u32 %v258_v27, %v257_v30 }
 0x135   :  { %vm263_vm12 = vcmp.lt.s32.totalorder %v1821_v14, 4  ;;  %v264_v33 = vsel %vm260_vm8, %v244_v59, %v247_v11  ;;  %v268_v34 = vsel %vm260_vm8, %v247_v11, %v250_v12  ;;  %v272_v38 = vsel %vm260_vm8, %v250_v12, %v253_v29  ;;  %v30_v59 = vld [vmem:[%s2475_s3] sm:$0xff] }
 0x136   :  { %v391_v36 = vsel %vm389_vm10, %v390_v31, %v1858_v9  ;;  %v265_v15 = vsel %vm263_vm12, %v253_v29, 2102212464  ;;  %v269_v37 = vsel %vm263_vm12, %v256_v32, 920167782  ;;  %v273_v42 = vsel %vm263_vm12, %v259_v8, 1326507024  ;;  %1460 = vmatprep.mubr.msk.f32.mxu1 %vm664_vm14, %v30_v59 }
 0x137   :  { %v392_v39 = vadd.s32 %v391_v36, %v387_v10  ;;  %v266_v40 = vsel %vm262_vm11, %v250_v12, %v265_v15  ;;  %v270_v41 = vsel %vm262_vm11, %v253_v29, %v269_v37  ;;  %v274_v48 = vsel %vm262_vm11, %v256_v32, %v273_v42 }
 0x138   :  { %v267_v43 = vsel %vm261_vm9, %v264_v33, %v266_v40  ;;  %v271_v45 = vsel %vm261_vm9, %v268_v34, %v270_v41  ;;  %vm551_vm13 = vcmp.gt.s32.totalorder %v1827_v23, 0  ;;  %v275_v51 = vsel %vm261_vm9, %v272_v38, %v274_v48 }
 0x139   :  { %v393_v49 = vadd.s32 536870912, %v392_v39  ;;  %v1890_v52 = vmul.u32.u64.low %v1819_v13, %v271_v45  ;;  %v1891_v53 = vmul.u32.u64.high %v1819_v13, %v271_v45, %v1890_v52  ;;  %v552_v57 = vsel %vm551_vm13, %v1827_v23, 0 }
 0x13a   :  { %v1895_v54 = vmul.u32.u64.low %v1819_v13, %v275_v51  ;;  %v1896_v56 = vmul.u32.u64.high %v1819_v13, %v275_v51, %v1895_v54  ;;  %v440_v58 = vshrl.u32 %v439_v17, 23  ;;  %v554_v62 = vand.u32 31, %v552_v57 }
 0x13b   :  { %v1904_v14 = vshrl.u32 %v393_v49, 30  ;;  %v283_v63 = vmul.u32 %v1819_v13, %v267_v43  ;;  %v1909_v0 = vshll.u32 %v548_v16, 8  ;;  %v1913_v1 = vand.u32 8388607, %v436_v6 }
 0x13c   :  { %v286_v23 = vadd.s32 1, %v1891_v53  ;;  %v553_v2 = vshrl.u32 %v552_v57, 5  ;;  %v555_v3 = vsub.s32 32, %v554_v62  ;;  %vm285_vm15 = vc.u32 %v1896_v56, %v1890_v52 }
 0x13d   :  { %v395_v17 = vshll.u32 %v1904_v14, 30  ;;  %v557_v5 = vshll.u32 %v1616_v19, %v554_v62  ;;  %v560_v13 = vshll.u32 %v1617_v21, %v554_v62  ;;  %v1350_v16 = vadd.s32 4294967169, %v440_v58 }
 0x13e   :  { %v287_v11 = vsel %vm285_vm15, %v286_v23, %v1891_v53  ;;  %v558_v12 = vshrl.u32 %v1617_v21, %v555_v3  ;;  %v563_v18 = vshll.u32 %v1618_v24, %v554_v62  ;;  %v561_v10 = vshrl.u32 %v1618_v24, %v555_v3 }
 0x13f   :  { %v1922_v9 = vsub.s32 %v392_v39, %v395_v17  ;;  %v288_v20 = vadd.s32 %v287_v11, %v283_v63  ;;  %v564_v22 = vshrl.u32 %v1619_v26, %v555_v3  ;;  %v566_v25 = vshll.u32 %v1619_v26, %v554_v62 }
 0x140   :  { %v559_v29 = vor.u32 %v558_v12, %v557_v5  ;;  %v567_v30 = vshrl.u32 %v1620_v28, %v555_v3  ;;  %v569_v31 = vshll.u32 %v1620_v28, %v554_v62  ;;  %v562_v8 = vor.u32 %v561_v10, %v560_v13 }
 0x141   :  { %v398_v27 = vsub.s32 0, %v1922_v9  ;;  %v289_v32 = vadd.s32 536870912, %v288_v20  ;;  %v565_v33 = vor.u32 %v564_v22, %v563_v18  ;;  %v570_v34 = vshrl.u32 %v1621_v35, %v555_v3 }
 0x142   :  { %v556_v15 = vshrl.u32 %v1616_v19, %v555_v3  ;;  %v568_v37 = vor.u32 %v567_v30, %v566_v25  ;;  %vm572_vm0 = vcmp.lt.s32.totalorder %v553_v2, 1  ;;  %vm574_vm1 = vcmp.lt.s32.totalorder %v553_v2, 3 }
 0x143   :  { %v1347_v36 = vmin.u32 %v398_v27, %v1922_v9  ;;  %v290_v38 = vshrl.u32 %v289_v32, 30  ;;  %v571_v39 = vor.u32 %v570_v34, %v569_v31  ;;  %vm575_vm2 = vcmp.lt.s32.totalorder %v553_v2, 4 }
 0x144   :  { %v576_v41 = vsel %vm572_vm0, %v556_v15, %v559_v29  ;;  %v577_v42 = vsel %vm575_vm2, %v565_v33, 2102212464  ;;  %v580_v43 = vsel %vm572_vm0, %v559_v29, %v562_v8  ;;  %v581_v49 = vsel %vm575_vm2, %v568_v37, 920167782 }
 0x145   :  { %v400_v40 = vclz %v1347_v36  ;;  %v291_v45 = vshll.u32 %v290_v38, 30  ;;  %v578_v48 = vsel %vm574_vm1, %v562_v8, %v577_v42  ;;  %v584_v51 = vsel %vm572_vm0, %v562_v8, %v565_v33 }
 0x146   :  { %vm573_vm3 = vcmp.lt.s32.totalorder %v553_v2, 2  ;;  %v582_v54 = vsel %vm574_vm1, %v565_v33, %v581_v49  ;;  %v585_v57 = vsel %vm575_vm2, %v571_v39, 1326507024  ;;  %v388_v18 = vadd.s32 %v1857_v7, %v1854_v4 }
 0x147   :  { %v1348_v53 = vadd.s32 4294967294, %v400_v40  ;;  %v1938_v58 = vsub.s32 %v288_v20, %v291_v45  ;;  %v579_v59 = vsel %vm573_vm3, %v576_v41, %v578_v48  ;;  %v583_v62 = vsel %vm573_vm3, %v580_v43, %v582_v54 }
 0x148   :  { %v586_v63 = vsel %vm574_vm1, %v568_v37, %v585_v57  ;;  %v1942_v23 = vmul.u32.u64.low %v1909_v0, %v583_v62  ;;  %v1943_v3 = vmul.u32.u64.high %v1909_v0, %v583_v62, %v1942_v23  ;;  %v446_v10 = vadd.s32 1, %v1350_v16 }
 0x149   :  { %vm1349_vm4 = vcmp.lt.s32.totalorder %v1348_v53, 0  ;;  %v587_v17 = vsel %vm573_vm3, %v584_v51, %v586_v63  ;;  %v294_v13 = vsub.s32 0, %v1938_v58  ;;  %v595_v27 = vmul.u32 %v1909_v0, %v579_v59 }
 0x14a   :  { %v403_v5 = vsel %vm1349_vm4, 0, %v1348_v53  ;;  %v1948_v11 = vmul.u32.u64.low %v1909_v0, %v587_v17  ;;  %v1949_v12 = vmul.u32.u64.high %v1909_v0, %v587_v17, %v1948_v11  ;;  %v444_v29 = vor.u32 8388608, %v1913_v1 }
 0x14b   :  { %v404_v20 = vsub.s32 32, %v403_v5  ;;  %v408_v2 = vsub.s32 4294967266, %v403_v5  ;;  %v405_v22 = vshll.u32 %v1922_v9, %v403_v5  ;;  %v1343_v25 = vmin.u32 %v294_v13, %v1938_v58 }
 0x14c   :  { %v598_v32 = vadd.s32 1, %v1943_v3  ;;  %vm447_vm5 = vcmp.gt.s32.totalorder %v446_v10, 0  ;;  %vm597_vm6 = vc.u32 %v1949_v12, %v1942_v23  ;;  %v314_v7 = vsub.s32 4, %v290_v38 }
 0x14d   :  { %v406_v30 = vshrl.u32 %v388_v18, %v404_v20  ;;  %v409_v31 = vadd.s32 127, %v408_v2  ;;  %v296_v8 = vclz %v1343_v25  ;;  %v448_v4 = vsel %vm447_vm5, %v446_v10, 0 }
 0x14e   :  { %vm230_vm7 = vcmp.lt.s32.totalorder %v1796_v46, 0  ;;  %v599_v9 = vsel %vm597_vm6, %v598_v32, %v1943_v3  ;;  %v284_v0 = vadd.s32 %v1890_v52, %v1896_v56  ;;  %v450_v36 = vand.u32 31, %v448_v4 }
 0x14f   :  { %v407_v16 = vor.u32 %v406_v30, %v405_v22  ;;  %v410_v33 = vshll.u32 %v409_v31, 23  ;;  %v1344_v1 = vadd.s32 4294967294, %v296_v8  ;;  %v600_v34 = vadd.s32 %v599_v9, %v595_v27 }
 0x150   :  { %v1964_v37 = vshrl.u32 %v448_v4, 5  ;;  %v1966_v39 = vshll.u32 %v444_v29, 8  ;;  %v418_v40 = vsub.s32 4, %v1904_v14  ;;  %v451_v42 = vsub.s32 32, %v450_v36 }
 0x151   :  { %v411_v15 = vor.u32 4788187, %v410_v33  ;;  %vm1345_vm8 = vcmp.lt.s32.totalorder %v1344_v1, 0  ;;  %v601_v41 = vadd.s32 536870912, %v600_v34  ;;  %v1971_v43 = vsel %vm230_vm7, %v314_v7, %v290_v38 }
 0x152   :  { %v414_v48 = vcvt.s32.f32 %v407_v16  ;;  %v299_v52 = vsel %vm1345_vm8, 0, %v1344_v1  ;;  %v453_v56 = vshll.u32 %v1616_v19, %v450_v36  ;;  %v456_v54 = vshll.u32 %v1617_v21, %v450_v36 }
 0x153   :  { %v412_v45 = vand.u32 2147483647, %v411_v15  ;;  %v300_v49 = vsub.s32 32, %v299_v52  ;;  %v304_v51 = vsub.s32 4294967266, %v299_v52  ;;  %v1974_v53 = vshrl.u32 %v601_v41, 30 }
 0x154   :  { %v301_v59 = vshll.u32 %v1938_v58, %v299_v52  ;;  %v454_v62 = vshrl.u32 %v1617_v21, %v451_v42  ;;  %v457_v63 = vshrl.u32 %v1618_v24, %v451_v42  ;;  %vm334_vm9 = vcmp.lt.s32.totalorder %v1794_v44, 0 }
 0x155   :  { %v415_v57 = vmul.f32 %v414_v48, %v412_v45  ;;  %v302_v38 = vshrl.u32 %v284_v0, %v300_v49  ;;  %v305_v17 = vadd.s32 127, %v304_v51  ;;  %v603_v3 = vshll.u32 %v1974_v53, 30 }
 0x156   :  { %v460_v5 = vshrl.u32 %v1619_v26, %v451_v42  ;;  %v455_v13 = vor.u32 %v454_v62, %v453_v56  ;;  %v458_v11 = vor.u32 %v457_v63, %v456_v54  ;;  %v459_v18 = vshll.u32 %v1618_v24, %v450_v36 }
 0x157   :  { %vm468_vm10 = vcmp.lt.s32.totalorder %v1964_v37, 1  ;;  %v303_v20 = vor.u32 %v302_v38, %v301_v59  ;;  %v306_v58 = vshll.u32 %v305_v17, 23  ;;  %v1985_v2 = vsub.s32 %v600_v34, %v603_v3 }
 0x158   :  { %v462_v10 = vshll.u32 %v1619_v26, %v450_v36  ;;  %v461_v22 = vor.u32 %v460_v5, %v459_v18  ;;  %v463_v25 = vshrl.u32 %v1620_v28, %v451_v42  ;;  %v465_v27 = vshll.u32 %v1620_v28, %v450_v36 }
 0x159   :  { %v466_v29 = vshrl.u32 %v1621_v35, %v451_v42  ;;  %v416_v30 = vxor.u32 2147483648, %v415_v57  ;;  %v307_v31 = vor.u32 4788187, %v306_v58  ;;  %v606_v32 = vsub.s32 0, %v1985_v2 }
 0x15a   :  { %v452_v8 = vshrl.u32 %v1616_v19, %v451_v42  ;;  %v310_v4 = vcvt.s32.f32 %v303_v20  ;;  %v464_v7 = vor.u32 %v463_v25, %v462_v10  ;;  %vm470_vm11 = vcmp.lt.s32.totalorder %v1964_v37, 3 }
 0x15b   :  { %v467_v16 = vor.u32 %v466_v29, %v465_v27  ;;  %v308_v33 = vand.u32 2147483647, %v307_v31  ;;  %v1355_v9 = vmin.u32 %v606_v32, %v1985_v2  ;;  %vm471_vm12 = vcmp.lt.s32.totalorder %v1964_v37, 4 }
 0x15c   :  { %v476_v0 = vsel %vm468_vm10, %v455_v13, %v458_v11  ;;  %v473_v1 = vsel %vm471_vm12, %v461_v22, 2102212464  ;;  %v477_v34 = vsel %vm471_vm12, %v464_v7, 920167782  ;;  %v480_v36 = vsel %vm468_vm10, %v458_v11, %v461_v22 }
 0x15d   :  { %v481_v15 = vsel %vm471_vm12, %v467_v16, 1326507024  ;;  %v311_v41 = vmul.f32 %v310_v4, %v308_v33  ;;  %v608_v42 = vclz %v1355_v9  ;;  %vm469_vm13 = vcmp.lt.s32.totalorder %v1964_v37, 2 }
 0x15e   :  { %v478_v45 = vsel %vm470_vm11, %v461_v22, %v477_v34  ;;  %v417_v48 = vsel %vm334_vm9, %v416_v30, %v415_v57  ;;  %v472_v52 = vsel %vm468_vm10, %v452_v8, %v455_v13  ;;  %v482_v49 = vsel %vm470_vm11, %v464_v7, %v481_v15 }
 0x15f   :  { %v479_v56 = vsel %vm469_vm13, %v476_v0, %v478_v45  ;;  %v312_v51 = vxor.u32 2147483648, %v311_v41  ;;  %v1356_v54 = vadd.s32 4294967294, %v608_v42  ;;  %v474_v59 = vsel %vm470_vm11, %v458_v11, %v473_v1 }
 0x160   :  { %v483_v62 = vsel %vm469_vm13, %v480_v36, %v482_v49  ;;  %v2020_v38 = vmul.u32.u64.low %v1966_v39, %v479_v56  ;;  %v2021_v17 = vmul.u32.u64.high %v1966_v39, %v479_v56, %v2020_v38  ;;  %vm2028_vm0 = vcmp.le.f32.partialorder %v228_v50, 0.7853982 }
 0x161   :  { %v2016_v63 = vmul.u32.u64.low %v1966_v39, %v483_v62  ;;  %v2017_v57 = vmul.u32.u64.high %v1966_v39, %v483_v62, %v2016_v63  ;;  %v313_v3 = vsel %vm230_vm7, %v312_v51, %v311_v41  ;;  %vm1357_vm15 = vcmp.lt.s32.totalorder %v1356_v54, 0 }
 0x162   :  { %v611_v13 = vsel %vm1357_vm15, 0, %v1356_v54  ;;  %v475_v11 = vsel %vm469_vm13, %v472_v52, %v474_v59  ;;  %v316_v18 = vsel %vm2028_vm0, %v1796_v46, %v313_v3  ;;  %vm2039_vm1 = vcmp.le.f32.partialorder %v332_v47, 0.7853982 }
 0x163   :  { %v616_v58 = vsub.s32 4294967266, %v611_v13  ;;  %v317_v50 = vsel %vm2028_vm0, 0, %v1971_v43  ;;  %1583 = vcosq.f32 %v316_v18  ;;  %v420_v37 = vsel %vm2039_vm1, %v1794_v44, %v417_v48 }
 0x164   :  { %vm493_vm2 = vc.u32 %v2017_v57, %v2020_v38  ;;  %v494_v10 = vadd.s32 1, %v2021_v17  ;;  %1585 = vsinq.f32 %v316_v18  ;;  %v419_v47 = vsel %vm334_vm9, %v418_v40, %v1904_v14 }
 0x165   :  { %v612_v22 = vsub.s32 32, %v611_v13  ;;  %v617_v25 = vadd.s32 127, %v616_v58  ;;  %v491_v43 = vmul.u32 %v1966_v39, %v475_v11  ;;  %v596_v27 = vadd.s32 %v1942_v23, %v1949_v12 }
 0x166   :  { %v495_v29 = vsel %vm493_vm2, %v494_v10, %v2021_v17  ;;  %v321_v30 = vadd.s32 3, %v317_v50  ;;  %1587 = vcosq.f32 %v420_v37  ;;  %v421_v8 = vsel %vm2039_vm1, 0, %v419_v47 }
 0x167   :  { %v618_v31 = vshll.u32 %v617_v25, 23  ;;  %v496_v32 = vadd.s32 %v495_v29, %v491_v43  ;;  %1589 = vsinq.f32 %v420_v37  ;;  %v614_v4 = vshrl.u32 %v596_v27, %v612_v22 }
 0x168   :  { %v425_v14 = vadd.s32 3, %v421_v8  ;;  %v613_v40 = vshll.u32 %v1985_v2, %v611_v13  ;;  %v322_v33 = vand.u32 3, %v321_v30  ;;  %vm320_vm6 = vweird.f32 %v1796_v46 }
 0x169   :  { %v497_v7 = vadd.s32 536870912, %v496_v32  ;;  %v619_v16 = vor.u32 4788187, %v618_v31  ;;  %vm424_vm10 = vweird.f32 %v1794_v44  ;;  %vm542_vm12 = vcmp.lt.s32.totalorder %v1804_v55, 0 }
 0x16a   :  { %v615_v12 = vor.u32 %v614_v4, %v613_v40  ;;  %v426_v34 = vand.u32 3, %v425_v14  ;;  %vm327_vm3 = vcmp.eq.s32.totalorder %v322_v33, 2  ;;  %vm323_vm4 = vcmp.lt.s32.totalorder %v322_v33, 2 }
 0x16b   :  { %v2064_v39 = vshrl.u32 %v497_v7, 30  ;;  %v620_v36 = vand.u32 2147483647, %v619_v16  ;;  %vm324_vm5 = vcmp.eq.s32.totalorder %v322_v33, 0  ;;  %v492_v37 = vadd.s32 %v2020_v38, %v2017_v57 }
 0x16c   :  { %v622_v48 = vcvt.s32.f32 %v615_v12  ;;  %vm431_vm7 = vcmp.eq.s32.totalorder %v426_v34, 2  ;;  %vm428_vm8 = vcmp.eq.s32.totalorder %v426_v34, 0  ;;  %vm427_vm9 = vcmp.lt.s32.totalorder %v426_v34, 2 }
 0x16d   :  { %v1584_v23 = vpop.eup %1583  ;;  %v499_v9 = vshll.u32 %v2064_v39, 30  ;;  %vm2076_vm13 = vcmp.le.f32.partialorder %v540_v60, 0.7853982  ;;  %v626_v31 = vsub.s32 4, %v1974_v53  ;;  %v522_v4 = vsub.s32 4, %v2064_v39 }
 0x16e   :  { %v1586_v0 = vpop.eup %1585  ;;  %v328_v1 = vxor.u32 2147483648, %v1584_v23  ;;  %v623_v59 = vmul.f32 %v622_v48, %v620_v36  ;;  %vm438_vm15 = vcmp.lt.s32.totalorder %v1809_v61, 0  ;;  %vm437_vm0 = vcmp.le.f32.partialorder %v436_v6, 0.7853982 }
 0x16f   :  { %v500_v15 = vsub.s32 %v496_v32, %v499_v9  ;;  %v325_v41 = vxor.u32 2147483648, %v1586_v0  ;;  %v627_v60 = vsel %vm542_vm12, %v626_v31, %v1974_v53  ;;  %v523_v16 = vsel %vm438_vm15, %v522_v4, %v2064_v39 }
 0x170   :  { %v1588_v42 = vpop.eup %1587  ;;  %v329_v45 = vsel %vm327_vm3, %v328_v1, %v1586_v0  ;;  %v624_v18 = vxor.u32 2147483648, %v623_v59  ;;  %v629_v14 = vsel %vm2076_vm13, 0, %v627_v60  ;;  %v525_v9 = vsel %vm437_vm0, 0, %v523_v16 }
 0x171   :  { %v1590_v2 = vpop.eup %1589  ;;  %v502_v52 = vsub.s32 0, %v500_v15  ;;  %v326_v56 = vsel %vm324_vm5, %v1584_v23, %v325_v41  ;;  %v432_v49 = vxor.u32 2147483648, %v1588_v42  ;;  %v633_v23 = vadd.s32 3, %v629_v14 }
 0x172   :  { %v330_v51 = vsel %vm323_vm4, %v326_v56, %v329_v45  ;;  %v429_v54 = vxor.u32 2147483648, %v1590_v2  ;;  %v625_v50 = vsel %vm542_vm12, %v624_v18, %v623_v59  ;;  %v529_v1 = vadd.s32 3, %v525_v9 }
 0x173   :  { %v1351_v62 = vmin.u32 %v502_v52, %v500_v15  ;;  %v433_v63 = vsel %vm431_vm7, %v432_v49, %v1590_v2  ;;  %v331_v17 = vsel %vm320_vm6, nan, %v330_v51  ;;  %v628_v27 = vsel %vm2076_vm13, %v1804_v55, %v625_v50 }
 0x174   :  { %v430_v3 = vsel %vm428_vm8, %v1588_v42, %v429_v54  ;;  %1591 = vcosq.f32 %v628_v27  ;;  %v634_v0 = vand.u32 3, %v633_v23  ;;  %vm632_vm6 = vweird.f32 %v1804_v55  ;;  %v33_v55 = vld [vmem:[%s2475_s3 + $0x18] sm:$0xff] }
 0x175   :  { %v504_v5 = vclz %v1351_v62  ;;  %v434_v13 = vsel %vm427_vm9, %v430_v3, %v433_v63  ;;  %1593 = vsinq.f32 %v628_v27  ;;  %vm528_vm8 = vweird.f32 %v1809_v61  ;;  %v31_v62 = vld [vmem:[%s2475_s3 + $0x8] sm:$0xff]  ;;  %v32_v63 = vld [vmem:[%s2475_s3 + $0x10] sm:$0xff]  ;;  %v647_v3 = vpop.permute.xlu0 %646 }
 0x176   :  { %v435_v11 = vsel %vm424_vm10, nan, %v434_v13  ;;  %vm636_vm1 = vcmp.eq.s32.totalorder %v634_v0, 0  ;;  %vm639_vm2 = vcmp.eq.s32.totalorder %v634_v0, 2  ;;  %vm635_vm3 = vcmp.lt.s32.totalorder %v634_v0, 2 }
 0x177   :  { %v1352_v20 = vadd.s32 4294967294, %v504_v5  ;;  %v1525_v58 = vpack.c.bf16 %v435_v11, %v331_v17 }
 0x179   :  { %vm1353_vm11 = vcmp.lt.s32.totalorder %v1352_v20, 0  ;;  %1526 = vmatprep.subr.bf16.mxu1 %v1525_v58  ;;  %v657_v27 = vpop.permute.xlu0 %656 }
 0x17a   :  { %v507_v46 = vsel %vm1353_vm11, 0, %v1352_v20  ;;  %1528 = vmatpush3.bf16.msra.mxu1 %v1525_v58 }
 0x17b   :  { %v508_v10 = vsub.s32 32, %v507_v46  ;;  %v512_v47 = vsub.s32 4294967266, %v507_v46  ;;  %v509_v22 = vshll.u32 %v500_v15, %v507_v46  ;;  %v530_v15 = vand.u32 3, %v529_v1 }
 0x17d   :  { %v510_v25 = vshrl.u32 %v492_v37, %v508_v10  ;;  %v513_v43 = vadd.s32 127, %v512_v47  ;;  %vm535_vm4 = vcmp.eq.s32.totalorder %v530_v15, 2  ;;  %vm532_vm5 = vcmp.eq.s32.totalorder %v530_v15, 0 }
 0x17e   :  { %v1592_v12 = vpop.eup %1591  ;;  %vm531_vm7 = vcmp.lt.s32.totalorder %v530_v15, 2 }
 0x17f   :  { %v511_v29 = vor.u32 %v510_v25, %v509_v22  ;;  %v514_v30 = vshll.u32 %v513_v43, 23  ;;  %v1594_v53 = vpop.eup %1593  ;;  %v640_v36 = vxor.u32 2147483648, %v1592_v12 }
 0x180   :  { %v637_v34 = vxor.u32 2147483648, %v1594_v53 }
 0x181   :  { %v515_v57 = vor.u32 4788187, %v514_v30  ;;  %v518_v32 = vcvt.s32.f32 %v511_v29  ;;  %v641_v6 = vsel %vm639_vm2, %v640_v36, %v1594_v53 }
 0x182   :  { %v638_v41 = vsel %vm636_vm1, %v1592_v12, %v637_v34 }
 0x183   :  { %v516_v38 = vand.u32 2147483647, %v515_v57  ;;  %v642_v2 = vsel %vm635_vm3, %v638_v41, %v641_v6 }
 0x184   :  { %v643_v49 = vsel %vm632_vm6, nan, %v642_v2 }
 0x185   :  { %v519_v8 = vmul.f32 %v518_v32, %v516_v38 }
 0x187   :  { %v520_v7 = vxor.u32 2147483648, %v519_v8 }
 0x189   :  { %v521_v40 = vsel %vm438_vm15, %v520_v7, %v519_v8 }
 0x18a   :  { %v524_v33 = vsel %vm437_vm0, %v1809_v61, %v521_v40  ;;  %v652_v61 = vpop.permute.xlu1 %651  ;;  %v34_v40 = vld [vmem:[%s2476_s5] sm:$0xff] }
 0x18b   :  { %1595 = vcosq.f32 %v524_v33 }
 0x18c   :  { %1597 = vsinq.f32 %v524_v33 }
 0x18e   :  { %v662_v58 = vpop.permute.xlu1 %661 }
 0x195   :  { %v1596_v42 = vpop.eup %1595 }
 0x196   :  { %v1598_v39 = vpop.eup %1597  ;;  %v536_v45 = vxor.u32 2147483648, %v1596_v42 }
 0x197   :  { %v533_v48 = vxor.u32 2147483648, %v1598_v39 }
 0x198   :  { %v537_v52 = vsel %vm535_vm4, %v536_v45, %v1598_v39 }
 0x199   :  { %v534_v56 = vsel %vm532_vm5, %v1596_v42, %v533_v48 }
 0x19a   :  { %v538_v51 = vsel %vm531_vm7, %v534_v56, %v537_v52 }
 0x19b   :  { %v539_v54 = vsel %vm528_vm8, nan, %v538_v51 }
 0x19c   :  { %v1529_v59 = vpack.c.bf16 %v643_v49, %v539_v54 }
 0x19e   :  { %1530 = vmatprep.subr.bf16.mxu1 %v1529_v59 }
 0x19f   :  { %1532 = vmatpush3.bf16.msra.mxu1 %v1529_v59 }
 0x1a2   :  { %1461 = vmatmul.mubr.msk.f32.vlgmr.msra.gmra.mrb[0].mxu1 %vm664_vm14, %v31_v62 }
 0x1a3   :  { %1463 = vmatprep.mubr.msk.f32.mxu1 %vm664_vm14, %v32_v63 }
 0x1a6   :  { %1464 = vmatmul.mubr.msk.f32.gmra.mrb[2].mxu1 %vm664_vm14, %v33_v55 }
 0x1a7   :  { %1474 = vmatprep.mubr.msk.f32.mxu1 %vm664_vm14, %v34_v40 }
 0x275   :  { %v1462_v17 = vpop.f32.mrb[0].mxu1 }
 0x276   :  { %v2109_v5 = vadd.f32 %v1462_v17, %v652_v61  ;;  %v743_v13 = vpop.f32.mrb[1].mxu1 }
 0x277   :  { %v2111_v11 = vadd.f32 %v743_v13, %v647_v3 }
 0x278   :  { %v866_v18 = vand.u32 2147483647, %v2109_v5  ;;  %v869_v20 = vand.u32 2139095040, %v2109_v5 }
 0x279   :  { %v762_v46 = vand.u32 2147483647, %v2111_v11  ;;  %v765_v50 = vand.u32 2139095040, %v2111_v11  ;;  %v1465_v37 = vpop.f32.mrb[2].mxu1 }
 0x27a   :  { %v870_v10 = vshrl.u32 %v869_v20, 23  ;;  %v873_v47 = vand.u32 8388607, %v866_v18  ;;  %v2119_v44 = vadd.f32 %v1465_v37, %v662_v58  ;;  %v753_v22 = vpop.f32.mrb[3].mxu1 }
 0x27b   :  { %v766_v25 = vshrl.u32 %v765_v50, 23  ;;  %v769_v43 = vand.u32 8388607, %v762_v46  ;;  %v2125_v38 = vadd.f32 %v753_v22, %v657_v27 }
 0x27c   :  { %v1366_v29 = vadd.s32 4294967169, %v870_v10  ;;  %v1074_v30 = vand.u32 2147483647, %v2119_v44  ;;  %v1077_v57 = vand.u32 2139095040, %v2119_v44  ;;  %v874_v32 = vor.u32 8388608, %v873_v47 }
 0x27d   :  { %v1362_v31 = vadd.s32 4294967169, %v766_v25  ;;  %v770_v8 = vor.u32 8388608, %v769_v43  ;;  %v970_v23 = vand.u32 2147483647, %v2125_v38 }
 0x27e   :  { %v876_v60 = vadd.s32 1, %v1366_v29  ;;  %v1078_v7 = vshrl.u32 %v1077_v57, 23  ;;  %v2129_v14 = vand.u32 8388607, %v1074_v30  ;;  %v2136_v9 = vshll.u32 %v874_v32, 8 }
 0x27f   :  { %v772_v4 = vadd.s32 1, %v1362_v31  ;;  %v2140_v36 = vshll.u32 %v770_v8, 8 }
 0x280   :  { %vm877_vm9 = vcmp.gt.s32.totalorder %v876_v60, 0  ;;  %v1374_v33 = vadd.s32 4294967169, %v1078_v7  ;;  %v1082_v15 = vor.u32 8388608, %v2129_v14 }
 0x281   :  { %v878_v16 = vsel %vm877_vm9, %v876_v60, 0  ;;  %vm773_vm10 = vcmp.gt.s32.totalorder %v772_v4, 0 }
 0x282   :  { %v879_v12 = vshrl.u32 %v878_v16, 5  ;;  %v880_v53 = vand.u32 31, %v878_v16  ;;  %v774_v0 = vsel %vm773_vm10, %v772_v4, 0  ;;  %v2145_v39 = vadd.s32 1, %v1374_v33 }
 0x283   :  { %v2138_v1 = vshrl.u32 %v774_v0, 5  ;;  %v776_v34 = vand.u32 31, %v774_v0 }
 0x284   :  { %v881_v41 = vsub.s32 32, %v880_v53  ;;  %v883_v6 = vshll.u32 %v1616_v19, %v880_v53  ;;  %v886_v42 = vshll.u32 %v1617_v21, %v880_v53  ;;  %v889_v45 = vshll.u32 %v1618_v24, %v880_v53 }
 0x285   :  { %v892_v2 = vshll.u32 %v1619_v26, %v880_v53  ;;  %v895_v48 = vshll.u32 %v1620_v28, %v880_v53  ;;  %vm898_vm11 = vcmp.lt.s32.totalorder %v879_v12, 1  ;;  %vm899_vm12 = vcmp.lt.s32.totalorder %v879_v12, 2 }
 0x286   :  { %v884_v52 = vshrl.u32 %v1617_v21, %v881_v41  ;;  %v887_v56 = vshrl.u32 %v1618_v24, %v881_v41  ;;  %v890_v49 = vshrl.u32 %v1619_v26, %v881_v41  ;;  %v882_v51 = vshrl.u32 %v1616_v19, %v881_v41 }
 0x287   :  { %v893_v54 = vshrl.u32 %v1620_v28, %v881_v41  ;;  %v896_v59 = vshrl.u32 %v1621_v35, %v881_v41  ;;  %vm900_vm13 = vcmp.lt.s32.totalorder %v879_v12, 3  ;;  %v777_v61 = vsub.s32 32, %v776_v34 }
 0x288   :  { %v885_v62 = vor.u32 %v884_v52, %v883_v6  ;;  %v888_v63 = vor.u32 %v887_v56, %v886_v42  ;;  %v891_v55 = vor.u32 %v890_v49, %v889_v45  ;;  %vm901_vm15 = vcmp.lt.s32.totalorder %v879_v12, 4 }
 0x289   :  { %v894_v17 = vor.u32 %v893_v54, %v892_v2  ;;  %v897_v3 = vor.u32 %v896_v59, %v895_v48  ;;  %v779_v13 = vshll.u32 %v1616_v19, %v776_v34  ;;  %v782_v25 = vshll.u32 %v1617_v21, %v776_v34 }
 0x28a   :  { %v902_v20 = vsel %vm898_vm11, %v882_v51, %v885_v62  ;;  %v903_v58 = vsel %vm901_vm15, %v891_v55, 2102212464  ;;  %v906_v50 = vsel %vm898_vm11, %v885_v62, %v888_v63  ;;  %v910_v37 = vsel %vm898_vm11, %v888_v63, %v891_v55 }
 0x28b   :  { %v904_v10 = vsel %vm900_vm13, %v888_v63, %v903_v58  ;;  %v907_v47 = vsel %vm901_vm15, %v894_v17, 920167782  ;;  %v911_v22 = vsel %vm901_vm15, %v897_v3, 1326507024  ;;  %v778_v29 = vshrl.u32 %v1616_v19, %v777_v61 }
 0x28c   :  { %v908_v43 = vsel %vm900_vm13, %v891_v55, %v907_v47  ;;  %v912_v27 = vsel %vm900_vm13, %v894_v17, %v911_v22  ;;  %v780_v31 = vshrl.u32 %v1617_v21, %v777_v61  ;;  %v905_v57 = vsel %vm899_vm12, %v902_v20, %v904_v10 }
 0x28d   :  { %v909_v32 = vsel %vm899_vm12, %v906_v50, %v908_v43  ;;  %v913_v60 = vsel %vm899_vm12, %v910_v37, %v912_v27  ;;  %v783_v8 = vshrl.u32 %v1618_v24, %v777_v61  ;;  %v785_v0 = vshll.u32 %v1618_v24, %v776_v34 }
 0x28e   :  { %v2171_v4 = vmul.u32.u64.low %v2136_v9, %v913_v60  ;;  %v2172_v7 = vmul.u32.u64.high %v2136_v9, %v913_v60, %v2171_v4  ;;  %v2175_v40 = vmul.u32.u64.low %v2136_v9, %v909_v32  ;;  %v2176_v16 = vmul.u32.u64.high %v2136_v9, %v909_v32, %v2175_v40 }
 0x28f   :  { %v781_v33 = vor.u32 %v780_v31, %v779_v13  ;;  %v784_v53 = vor.u32 %v783_v8, %v782_v25  ;;  %v786_v41 = vshrl.u32 %v1619_v26, %v777_v61  ;;  %v921_v6 = vmul.u32 %v2136_v9, %v905_v57 }
 0x290   :  { %v788_v12 = vshll.u32 %v1619_v26, %v776_v34  ;;  %v789_v42 = vshrl.u32 %v1620_v28, %v777_v61  ;;  %v792_v45 = vshrl.u32 %v1621_v35, %v777_v61  ;;  %v791_v48 = vshll.u32 %v1620_v28, %v776_v34 }
 0x291   :  { %v787_v2 = vor.u32 %v786_v41, %v785_v0  ;;  %vm794_vm0 = vcmp.lt.s32.totalorder %v2138_v1, 1  ;;  %vm795_vm1 = vcmp.lt.s32.totalorder %v2138_v1, 2  ;;  %vm923_vm2 = vc.u32 %v2172_v7, %v2175_v40 }
 0x292   :  { %v924_v52 = vadd.s32 1, %v2176_v16  ;;  %v790_v56 = vor.u32 %v789_v42, %v788_v12  ;;  %vm796_vm3 = vcmp.lt.s32.totalorder %v2138_v1, 3  ;;  %v793_v9 = vor.u32 %v792_v45, %v791_v48 }
 0x293   :  { %vm797_vm4 = vcmp.lt.s32.totalorder %v2138_v1, 4  ;;  %v798_v49 = vsel %vm794_vm0, %v778_v29, %v781_v33  ;;  %v802_v51 = vsel %vm794_vm0, %v781_v33, %v784_v53  ;;  %v806_v62 = vsel %vm794_vm0, %v784_v53, %v787_v2 }
 0x294   :  { %v925_v54 = vsel %vm923_vm2, %v924_v52, %v2176_v16  ;;  %v799_v59 = vsel %vm797_vm4, %v787_v2, 2102212464  ;;  %v803_v34 = vsel %vm797_vm4, %v790_v56, 920167782  ;;  %v807_v17 = vsel %vm797_vm4, %v793_v9, 1326507024 }
 0x295   :  { %v926_v63 = vadd.s32 %v925_v54, %v921_v6  ;;  %v800_v55 = vsel %vm796_vm3, %v784_v53, %v799_v59  ;;  %v804_v61 = vsel %vm796_vm3, %v787_v2, %v803_v34  ;;  %v808_v13 = vsel %vm796_vm3, %v790_v56, %v807_v17 }
 0x296   :  { %v805_v3 = vsel %vm795_vm1, %v802_v51, %v804_v61  ;;  %vm1085_vm5 = vcmp.gt.s32.totalorder %v2145_v39, 0  ;;  %v973_v20 = vand.u32 2139095040, %v2125_v38  ;;  %v809_v50 = vsel %vm795_vm1, %v806_v62, %v808_v13 }
 0x297   :  { %v927_v58 = vadd.s32 536870912, %v926_v63  ;;  %v2199_v37 = vmul.u32.u64.low %v2140_v36, %v805_v3  ;;  %v2200_v10 = vmul.u32.u64.high %v2140_v36, %v805_v3, %v2199_v37  ;;  %v801_v47 = vsel %vm795_vm1, %v798_v49, %v800_v55 }
 0x298   :  { %v2206_v22 = vmul.u32.u64.low %v2140_v36, %v809_v50  ;;  %v2207_v25 = vmul.u32.u64.high %v2140_v36, %v809_v50, %v2206_v22  ;;  %v1086_v43 = vsel %vm1085_vm5, %v2145_v39, 0  ;;  %v2213_v31 = vadd.s32 %v2175_v40, %v2172_v7 }
 0x299   :  { %v2210_v27 = vshrl.u32 %v927_v58, 30  ;;  %v1088_v29 = vand.u32 31, %v1086_v43  ;;  %v2217_v57 = vshll.u32 %v1082_v15, 8  ;;  %v974_v32 = vshrl.u32 %v973_v20, 23 }
 0x29a   :  { %v2221_v1 = vand.u32 8388607, %v970_v23  ;;  %v817_v8 = vmul.u32 %v2140_v36, %v801_v47  ;;  %v820_v39 = vadd.s32 1, %v2200_v10  ;;  %vm819_vm6 = vc.u32 %v2207_v25, %v2199_v37 }
 0x29b   :  { %v929_v60 = vshll.u32 %v2210_v27, 30  ;;  %v1089_v4 = vsub.s32 32, %v1088_v29  ;;  %v1087_v7 = vshrl.u32 %v1086_v43, 5  ;;  %v1091_v14 = vshll.u32 %v1616_v19, %v1088_v29 }
 0x29c   :  { %v1094_v15 = vshll.u32 %v1617_v21, %v1088_v29  ;;  %v821_v16 = vsel %vm819_vm6, %v820_v39, %v2200_v10  ;;  %v1097_v53 = vshll.u32 %v1618_v24, %v1088_v29  ;;  %v1100_v6 = vshll.u32 %v1619_v26, %v1088_v29 }
 0x29d   :  { %v2230_v40 = vsub.s32 %v926_v63, %v929_v60  ;;  %v1092_v33 = vshrl.u32 %v1617_v21, %v1089_v4  ;;  %v822_v36 = vadd.s32 %v821_v16, %v817_v8  ;;  %v1095_v0 = vshrl.u32 %v1618_v24, %v1089_v4 }
 0x29e   :  { %v1098_v41 = vshrl.u32 %v1619_v26, %v1089_v4  ;;  %v1101_v45 = vshrl.u32 %v1620_v28, %v1089_v4  ;;  %v1103_v2 = vshll.u32 %v1620_v28, %v1088_v29  ;;  %v1104_v9 = vshrl.u32 %v1621_v35, %v1089_v4 }
 0x29f   :  { %v932_v12 = vsub.s32 0, %v2230_v40  ;;  %v1093_v42 = vor.u32 %v1092_v33, %v1091_v14  ;;  %v823_v48 = vadd.s32 536870912, %v822_v36  ;;  %v1096_v52 = vor.u32 %v1095_v0, %v1094_v15 }
 0x2a0   :  { %v1099_v56 = vor.u32 %v1098_v41, %v1097_v53  ;;  %v1090_v51 = vshrl.u32 %v1616_v19, %v1089_v4  ;;  %v1102_v54 = vor.u32 %v1101_v45, %v1100_v6  ;;  %v1370_v59 = vadd.s32 4294967169, %v974_v32 }
 0x2a1   :  { %v1367_v49 = vmin.u32 %v932_v12, %v2230_v40  ;;  %v2244_v34 = vshrl.u32 %v823_v48, 30  ;;  %v1105_v62 = vor.u32 %v1104_v9, %v1103_v2  ;;  %vm1106_vm7 = vcmp.lt.s32.totalorder %v1087_v7, 1 }
 0x2a2   :  { %vm1109_vm8 = vcmp.lt.s32.totalorder %v1087_v7, 4  ;;  %vm1107_vm9 = vcmp.lt.s32.totalorder %v1087_v7, 2  ;;  %v1114_v61 = vsel %vm1106_vm7, %v1093_v42, %v1096_v52  ;;  %vm1108_vm10 = vcmp.lt.s32.totalorder %v1087_v7, 3 }
 0x2a3   :  { %v934_v63 = vclz %v1367_v49  ;;  %v1111_v55 = vsel %vm1109_vm8, %v1099_v56, 2102212464  ;;  %v825_v17 = vshll.u32 %v2244_v34, 30  ;;  %v1115_v3 = vsel %vm1109_vm8, %v1102_v54, 920167782 }
 0x2a4   :  { %v1118_v13 = vsel %vm1106_vm7, %v1096_v52, %v1099_v56  ;;  %v1110_v58 = vsel %vm1106_vm7, %v1090_v51, %v1093_v42  ;;  %v1116_v50 = vsel %vm1108_vm10, %v1099_v56, %v1115_v3  ;;  %v1119_v10 = vsel %vm1109_vm8, %v1105_v62, 1326507024 }
 0x2a5   :  { %v1368_v20 = vadd.s32 4294967294, %v934_v63  ;;  %v2247_v47 = vsub.s32 %v822_v36, %v825_v17  ;;  %v1112_v22 = vsel %vm1108_vm10, %v1096_v52, %v1111_v55  ;;  %v1117_v43 = vsel %vm1107_vm9, %v1114_v61, %v1116_v50 }
 0x2a6   :  { %v1120_v29 = vsel %vm1108_vm10, %v1102_v54, %v1119_v10  ;;  %v2252_v60 = vmul.u32.u64.low %v2217_v57, %v1117_v43  ;;  %v2253_v8 = vmul.u32.u64.high %v2217_v57, %v1117_v43, %v2252_v60  ;;  %v1113_v53 = vsel %vm1107_vm9, %v1110_v58, %v1112_v22 }
 0x2a7   :  { %vm1369_vm11 = vcmp.lt.s32.totalorder %v1368_v20, 0  ;;  %v1121_v32 = vsel %vm1107_vm9, %v1118_v13, %v1120_v29  ;;  %v828_v4 = vsub.s32 0, %v2247_v47  ;;  %v980_v36 = vadd.s32 1, %v1370_v59 }
 0x2a8   :  { %v937_v39 = vsel %vm1369_vm11, 0, %v1368_v20  ;;  %v2258_v14 = vmul.u32.u64.low %v2217_v57, %v1121_v32  ;;  %v2259_v15 = vmul.u32.u64.high %v2217_v57, %v1121_v32, %v2258_v14  ;;  %v978_v6 = vor.u32 8388608, %v2221_v1 }
 0x2a9   :  { %v938_v16 = vsub.s32 32, %v937_v39  ;;  %v942_v33 = vsub.s32 4294967266, %v937_v39  ;;  %v939_v0 = vshll.u32 %v2230_v40, %v937_v39  ;;  %v1363_v41 = vmin.u32 %v828_v4, %v2247_v47 }
 0x2aa   :  { %v1132_v45 = vadd.s32 1, %v2253_v8  ;;  %vm981_vm12 = vcmp.gt.s32.totalorder %v980_v36, 0  ;;  %v1129_v48 = vmul.u32 %v2217_v57, %v1113_v53  ;;  %vm1131_vm13 = vc.u32 %v2259_v15, %v2252_v60 }
 0x2ab   :  { %v940_v12 = vshrl.u32 %v2213_v31, %v938_v16  ;;  %v943_v42 = vadd.s32 127, %v942_v33  ;;  %v830_v2 = vclz %v1363_v41  ;;  %v982_v7 = vsel %vm981_vm12, %v980_v36, 0 }
 0x2ac   :  { %v818_v40 = vadd.s32 %v2199_v37, %v2207_v25  ;;  %v1133_v1 = vsel %vm1131_vm13, %v1132_v45, %v2253_v8  ;;  %vm868_vm15 = vcmp.lt.s32.totalorder %v2109_v5, 0  ;;  %v2274_v49 = vshrl.u32 %v982_v7, 5 }
 0x2ad   :  { %v941_v52 = vor.u32 %v940_v12, %v939_v0  ;;  %v944_v56 = vshll.u32 %v943_v42, 23  ;;  %v1364_v31 = vadd.s32 4294967294, %v830_v2  ;;  %v1134_v9 = vadd.s32 %v1133_v1, %v1129_v48 }
 0x2ae   :  { %v984_v51 = vand.u32 31, %v982_v7  ;;  %vm2278_vm0 = vcmp.le.f32.partialorder %v866_v18, 0.7853982  ;;  %v2282_v59 = vshll.u32 %v978_v6, 8  ;;  %v848_v37 = vsub.s32 4, %v2244_v34 }
 0x2af   :  { %v945_v54 = vor.u32 4788187, %v944_v56  ;;  %v952_v25 = vsub.s32 4, %v2210_v27  ;;  %v948_v62 = vcvt.s32.f32 %v941_v52  ;;  %vm1365_vm1 = vcmp.lt.s32.totalorder %v1364_v31, 0 }
 0x2b0   :  { %v1135_v63 = vadd.s32 536870912, %v1134_v9  ;;  %v985_v55 = vsub.s32 32, %v984_v51  ;;  %v833_v17 = vsel %vm1365_vm1, 0, %v1364_v31  ;;  %v987_v3 = vshll.u32 %v1616_v19, %v984_v51 }
 0x2b1   :  { %v946_v61 = vand.u32 2147483647, %v945_v54  ;;  %v990_v18 = vshll.u32 %v1617_v21, %v984_v51  ;;  %v834_v13 = vsub.s32 32, %v833_v17  ;;  %v838_v20 = vsub.s32 4294967266, %v833_v17 }
 0x2b2   :  { %v2288_v58 = vshrl.u32 %v1135_v63, 30  ;;  %v993_v50 = vshll.u32 %v1618_v24, %v984_v51  ;;  %vm1002_vm2 = vcmp.lt.s32.totalorder %v2274_v49, 1  ;;  %v835_v22 = vshll.u32 %v2247_v47, %v833_v17 }
 0x2b3   :  { %v949_v10 = vmul.f32 %v948_v62, %v946_v61  ;;  %v988_v43 = vshrl.u32 %v1617_v21, %v985_v55  ;;  %v991_v29 = vshrl.u32 %v1618_v24, %v985_v55  ;;  %v836_v32 = vshrl.u32 %v818_v40, %v834_v13 }
 0x2b4   :  { %v839_v8 = vadd.s32 127, %v838_v20  ;;  %v1137_v39 = vshll.u32 %v2288_v58, 30  ;;  %v994_v4 = vshrl.u32 %v1619_v26, %v985_v55  ;;  %v996_v53 = vshll.u32 %v1619_v26, %v984_v51 }
 0x2b5   :  { %v950_v14 = vxor.u32 2147483648, %v949_v10  ;;  %v989_v16 = vor.u32 %v988_v43, %v987_v3  ;;  %v992_v33 = vor.u32 %v991_v29, %v990_v18  ;;  %vm764_vm3 = vcmp.lt.s32.totalorder %v2111_v11, 0 }
 0x2b6   :  { %v837_v36 = vor.u32 %v836_v32, %v835_v22  ;;  %v840_v0 = vshll.u32 %v839_v8, 23  ;;  %v2299_v47 = vsub.s32 %v1134_v9, %v1137_v39  ;;  %v995_v21 = vor.u32 %v994_v4, %v993_v50 }
 0x2b7   :  { %v951_v24 = vsel %vm868_vm15, %v950_v14, %v949_v10  ;;  %v997_v41 = vshrl.u32 %v1620_v28, %v985_v55  ;;  %v999_v6 = vshll.u32 %v1620_v28, %v984_v51  ;;  %v1000_v12 = vshrl.u32 %v1621_v35, %v985_v55 }
 0x2b8   :  { %v954_v26 = vsel %vm2278_vm0, %v2109_v5, %v951_v24  ;;  %vm2311_vm4 = vcmp.le.f32.partialorder %v762_v46, 0.7853982  ;;  %v841_v45 = vor.u32 4788187, %v840_v0  ;;  %v1140_v2 = vsub.s32 0, %v2299_v47 }
 0x2b9   :  { %v986_v48 = vshrl.u32 %v1616_v19, %v985_v55  ;;  %1599 = vcosq.f32 %v954_v26  ;;  %v844_v7 = vcvt.s32.f32 %v837_v36  ;;  %v998_v28 = vor.u32 %v997_v41, %v996_v53 }
 0x2ba   :  { %v1001_v52 = vor.u32 %v1000_v12, %v999_v6  ;;  %1601 = vsinq.f32 %v954_v26  ;;  %v842_v35 = vand.u32 2147483647, %v841_v45  ;;  %v1375_v56 = vmin.u32 %v1140_v2, %v2299_v47 }
 0x2bb   :  { %vm1005_vm5 = vcmp.lt.s32.totalorder %v2274_v49, 4  ;;  %vm1004_vm6 = vcmp.lt.s32.totalorder %v2274_v49, 3  ;;  %v1010_v40 = vsel %vm1002_vm2, %v989_v16, %v992_v33  ;;  %vm1003_vm7 = vcmp.lt.s32.totalorder %v2274_v49, 2 }
 0x2bc   :  { %v1007_v46 = vsel %vm1005_vm5, %v995_v21, 2102212464  ;;  %v1011_v1 = vsel %vm1005_vm5, %v998_v28, 920167782  ;;  %v845_v31 = vmul.f32 %v844_v7, %v842_v35  ;;  %v1142_v9 = vclz %v1375_v56 }
 0x2bd   :  { %v1012_v19 = vsel %vm1004_vm6, %v995_v21, %v1011_v1  ;;  %v1006_v51 = vsel %vm1002_vm2, %v986_v48, %v989_v16  ;;  %v1014_v62 = vsel %vm1002_vm2, %v992_v33, %v995_v21  ;;  %v1015_v63 = vsel %vm1005_vm5, %v1001_v52, 1326507024 }
 0x2be   :  { %v1013_v54 = vsel %vm1003_vm7, %v1010_v40, %v1012_v19  ;;  %v846_v55 = vxor.u32 2147483648, %v845_v31  ;;  %v1376_v61 = vadd.s32 4294967294, %v1142_v9  ;;  %v1008_v17 = vsel %vm1004_vm6, %v992_v33, %v1007_v46 }
 0x2bf   :  { %v1016_v3 = vsel %vm1004_vm6, %v998_v28, %v1015_v63  ;;  %v2332_v13 = vmul.u32.u64.low %v2282_v59, %v1013_v54  ;;  %v2333_v20 = vmul.u32.u64.high %v2282_v59, %v1013_v54, %v2332_v13  ;;  %v849_v50 = vsel %vm764_vm3, %v848_v37, %v2244_v34 }
 0x2c0   :  { %v1017_v18 = vsel %vm1003_vm7, %v1014_v62, %v1016_v3  ;;  %v847_v10 = vsel %vm764_vm3, %v846_v55, %v845_v31  ;;  %vm1377_vm8 = vcmp.lt.s32.totalorder %v1376_v61, 0  ;;  %v1009_v8 = vsel %vm1003_vm7, %v1006_v51, %v1008_v17 }
 0x2c1   :  { %v2344_v22 = vmul.u32.u64.low %v2282_v59, %v1017_v18  ;;  %v2345_v43 = vmul.u32.u64.high %v2282_v59, %v1017_v18, %v2344_v22  ;;  %v850_v29 = vsel %vm2311_vm4, %v2111_v11, %v847_v10  ;;  %v1145_v32 = vsel %vm1377_vm8, 0, %v1376_v61 }
 0x2c2   :  { %v953_v34 = vsel %vm868_vm15, %v952_v25, %v2210_v27  ;;  %1603 = vcosq.f32 %v850_v29  ;;  %v1150_v37 = vsub.s32 4294967266, %v1145_v32  ;;  %v851_v39 = vsel %vm2311_vm4, 0, %v849_v50 }
 0x2c3   :  { %v1600_v4 = vpop.eup %1599  ;;  %1605 = vsinq.f32 %v850_v29  ;;  %v1028_v14 = vadd.s32 1, %v2333_v20  ;;  %v955_v16 = vsel %vm2278_vm0, 0, %v953_v34  ;;  %v1146_v33 = vsub.s32 32, %v1145_v32 }
 0x2c4   :  { %v1602_v49 = vpop.eup %1601  ;;  %v1151_v53 = vadd.s32 127, %v1150_v37  ;;  %v1025_v36 = vmul.u32 %v2282_v59, %v1009_v8  ;;  %vm1027_vm9 = vc.u32 %v2345_v43, %v2332_v13  ;;  %v855_v25 = vadd.s32 3, %v851_v39 }
 0x2c5   :  { %v1029_v27 = vsel %vm1027_vm9, %v1028_v14, %v2333_v20  ;;  %v1130_v0 = vadd.s32 %v2252_v60, %v2259_v15  ;;  %v959_v41 = vadd.s32 3, %v955_v16  ;;  %v963_v6 = vxor.u32 2147483648, %v1602_v49 }
 0x2c6   :  { %v1152_v21 = vshll.u32 %v1151_v53, 23  ;;  %v1030_v24 = vadd.s32 %v1029_v27, %v1025_v36  ;;  %v966_v42 = vxor.u32 2147483648, %v1600_v4  ;;  %v856_v45 = vand.u32 3, %v855_v25 }
 0x2c7   :  { %v1148_v57 = vshrl.u32 %v1130_v0, %v1146_v33  ;;  %v960_v26 = vand.u32 3, %v959_v41  ;;  %v1147_v59 = vshll.u32 %v2299_v47, %v1145_v32  ;;  %vm958_vm15 = vweird.f32 %v2109_v5 }
 0x2c8   :  { %v1031_v12 = vadd.s32 536870912, %v1030_v24  ;;  %v1153_v2 = vor.u32 4788187, %v1152_v21  ;;  %vm861_vm13 = vcmp.eq.s32.totalorder %v856_v45, 2  ;;  %vm858_vm0 = vcmp.eq.s32.totalorder %v856_v45, 0 }
 0x2c9   :  { %vm962_vm10 = vcmp.eq.s32.totalorder %v960_v26, 0  ;;  %vm965_vm11 = vcmp.eq.s32.totalorder %v960_v26, 2  ;;  %v1149_v52 = vor.u32 %v1148_v57, %v1147_v59  ;;  %vm961_vm12 = vcmp.lt.s32.totalorder %v960_v26, 2 }
 0x2ca   :  { %v2369_v48 = vshrl.u32 %v1031_v12, 30  ;;  %v964_v7 = vsel %vm962_vm10, %v1600_v4, %v963_v6  ;;  %v967_v15 = vsel %vm965_vm11, %v966_v42, %v1602_v49  ;;  %v1154_v40 = vand.u32 2147483647, %v1153_v2 }
 0x2cb   :  { %v968_v46 = vsel %vm961_vm12, %v964_v7, %v967_v15  ;;  %v1156_v19 = vcvt.s32.f32 %v1149_v52  ;;  %vm857_vm1 = vcmp.lt.s32.totalorder %v856_v45, 2  ;;  %vm854_vm2 = vweird.f32 %v2111_v11 }
 0x2cc   :  { %v1604_v28 = vpop.eup %1603  ;;  %v1033_v60 = vshll.u32 %v2369_v48, 30  ;;  %v969_v31 = vsel %vm958_vm15, nan, %v968_v46  ;;  %vm1076_vm4 = vcmp.lt.s32.totalorder %v2119_v44, 0  ;;  %v1026_v11 = vadd.s32 %v2332_v13, %v2345_v43 }
 0x2cd   :  { %v1606_v35 = vpop.eup %1605  ;;  %v862_v56 = vxor.u32 2147483648, %v1604_v28  ;;  %v1157_v63 = vmul.f32 %v1156_v19, %v1154_v40  ;;  %vm2381_vm5 = vcmp.le.f32.partialorder %v1074_v30, 0.7853982  ;;  %v1160_v14 = vsub.s32 4, %v2288_v58  ;;  %v35_v40 = vld [vmem:[%s2476_s5 + $0x8] sm:$0xff] }
 0x2ce   :  { %v1034_v47 = vsub.s32 %v1030_v24, %v1033_v60  ;;  %v859_v1 = vxor.u32 2147483648, %v1606_v35  ;;  %v1056_v33 = vsub.s32 4, %v2369_v48  ;;  %vm972_vm6 = vcmp.lt.s32.totalorder %v2125_v38, 0 }
 0x2cf   :  { %v863_v9 = vsel %vm861_vm13, %v862_v56, %v1606_v35  ;;  %v1158_v5 = vxor.u32 2147483648, %v1157_v63  ;;  %v1161_v30 = vsel %vm1076_vm4, %v1160_v14, %v2288_v58  ;;  %vm971_vm7 = vcmp.le.f32.partialorder %v970_v23, 0.7853982 }
 0x2d0   :  { %v1036_v51 = vsub.s32 0, %v1034_v47  ;;  %v860_v54 = vsel %vm858_vm0, %v1604_v28, %v859_v1  ;;  %v1163_v36 = vsel %vm2381_vm5, 0, %v1161_v30  ;;  %v1057_v25 = vsel %vm972_vm6, %v1056_v33, %v2369_v48  ;;  %v1181_v1 = vpop.permute.xlu0 %1180 }
 0x2d1   :  { %v864_v62 = vsel %vm857_vm1, %v860_v54, %v863_v9  ;;  %v1159_v50 = vsel %vm1076_vm4, %v1158_v5, %v1157_v63  ;;  %v1167_v21 = vadd.s32 3, %v1163_v36  ;;  %v1059_v41 = vsel %vm971_vm7, 0, %v1057_v25  ;;  %v1186_v9 = vpop.permute.xlu1 %1185 }
 0x2d2   :  { %v1371_v55 = vmin.u32 %v1036_v51, %v1034_v47  ;;  %v865_v61 = vsel %vm854_vm2, nan, %v864_v62  ;;  %v1162_v37 = vsel %vm2381_vm5, %v2119_v44, %v1159_v50  ;;  %v1063_v57 = vadd.s32 3, %v1059_v41 }
 0x2d3   :  { %v1533_v17 = vpack.c.bf16 %v969_v31, %v865_v61  ;;  %1607 = vcosq.f32 %v1162_v37  ;;  %v1168_v6 = vand.u32 3, %v1167_v21  ;;  %vm1166_vm13 = vweird.f32 %v2119_v44 }
 0x2d4   :  { %v1038_v3 = vclz %v1371_v55  ;;  %1609 = vsinq.f32 %v1162_v37  ;;  %v1064_v42 = vand.u32 3, %v1063_v57  ;;  %vm1062_vm0 = vweird.f32 %v2125_v38 }
 0x2d5   :  { %1534 = vmatprep.subr.bf16.mxu1 %v1533_v17  ;;  %vm1170_vm8 = vcmp.eq.s32.totalorder %v1168_v6, 0  ;;  %vm1173_vm9 = vcmp.eq.s32.totalorder %v1168_v6, 2  ;;  %vm1169_vm10 = vcmp.lt.s32.totalorder %v1168_v6, 2  ;;  %vm1301_vm1 = vcmask 130048  }
 0x2d6   :  { %v1372_v18 = vadd.s32 4294967294, %v1038_v3  ;;  %1536 = vmatpush3.bf16.msra.mxu1 %v1533_v17  ;;  %vm1069_vm11 = vcmp.eq.s32.totalorder %v1064_v42, 2  ;;  %vm1066_vm12 = vcmp.eq.s32.totalorder %v1064_v42, 0  ;;  %vm1065_vm15 = vcmp.lt.s32.totalorder %v1064_v42, 2 }
 0x2d8   :  { %vm1373_vm3 = vcmp.lt.s32.totalorder %v1372_v18, 0 }
 0x2d9   :  { %v1041_v20 = vsel %vm1373_vm3, 0, %v1372_v18 }
 0x2da   :  { %v1042_v10 = vsub.s32 32, %v1041_v20  ;;  %v1046_v22 = vsub.s32 4294967266, %v1041_v20  ;;  %v1043_v32 = vshll.u32 %v1034_v47, %v1041_v20 }
 0x2dc   :  { %v1044_v8 = vshrl.u32 %v1026_v11, %v1042_v10  ;;  %v1047_v34 = vadd.s32 127, %v1046_v22 }
 0x2dd   :  { %v1608_v24 = vpop.eup %1607 }
 0x2de   :  { %v1045_v39 = vor.u32 %v1044_v8, %v1043_v32  ;;  %v1048_v4 = vshll.u32 %v1047_v34, 23  ;;  %v1610_v58 = vpop.eup %1609  ;;  %v1174_v26 = vxor.u32 2147483648, %v1608_v24 }
 0x2df   :  { %v1171_v12 = vxor.u32 2147483648, %v1610_v58 }
 0x2e0   :  { %v1049_v13 = vor.u32 4788187, %v1048_v4  ;;  %v1052_v16 = vcvt.s32.f32 %v1045_v39  ;;  %v1175_v23 = vsel %vm1173_vm9, %v1174_v26, %v1610_v58 }
 0x2e1   :  { %v1172_v45 = vsel %vm1170_vm8, %v1608_v24, %v1171_v12 }
 0x2e2   :  { %v1050_v43 = vand.u32 2147483647, %v1049_v13  ;;  %v1176_v7 = vsel %vm1169_vm10, %v1172_v45, %v1175_v23 }
 0x2e3   :  { %v1177_v15 = vsel %vm1166_vm13, nan, %v1176_v7 }
 0x2e4   :  { %v1053_v49 = vmul.f32 %v1052_v16, %v1050_v43 }
 0x2e6   :  { %v1054_v53 = vxor.u32 2147483648, %v1053_v49 }
 0x2e8   :  { %v1055_v27 = vsel %vm972_vm6, %v1054_v53, %v1053_v49 }
 0x2e9   :  { %v1058_v0 = vsel %vm971_vm7, %v2125_v38, %v1055_v27 }
 0x2ea   :  { %1611 = vcosq.f32 %v1058_v0 }
 0x2eb   :  { %1613 = vsinq.f32 %v1058_v0 }
 0x2f4   :  { %v1612_v59 = vpop.eup %1611 }
 0x2f5   :  { %v1614_v2 = vpop.eup %1613  ;;  %v1070_v48 = vxor.u32 2147483648, %v1612_v59 }
 0x2f6   :  { %v1067_v28 = vxor.u32 2147483648, %v1614_v2 }
 0x2f7   :  { %v1071_v52 = vsel %vm1069_vm11, %v1070_v48, %v1614_v2 }
 0x2f8   :  { %v1068_v60 = vsel %vm1066_vm12, %v1612_v59, %v1067_v28 }
 0x2f9   :  { %v1072_v35 = vsel %vm1065_vm15, %v1068_v60, %v1071_v52 }
 0x2fa   :  { %v1073_v56 = vsel %vm1062_vm0, nan, %v1072_v35 }
 0x2fb   :  { %v1537_v46 = vpack.c.bf16 %v1177_v15, %v1073_v56 }
 0x2fd   :  { %1538 = vmatprep.subr.bf16.mxu1 %v1537_v46 }
 0x2fe   :  { %1540 = vmatpush3.bf16.msra.mxu1 %v1537_v46 }
 0x301   :  { %1475 = vmatmul.mubr.msk.f32.vlgmr.msra.gmra.mrb[4].mxu1 %vm664_vm14, %v35_v40 }
 0x3d4   :  { %v1476_v47 = vpop.f32.mrb[4].mxu1 }
 0x3d5   :  { %v1260_v31 = vpop.f32.mrb[5].mxu1  ;;  %v1266_v19 = vadd.f32 %v1476_v47, %v1186_v9 }
 0x3d6   :  { %v1261_v44 = vadd.f32 %v1260_v31, %v1181_v1 }
 0x3d8   :  { %1269 = vxpose.xlu0.b32.start [1/2] (short) %v1261_v44, 128 }
 0x3dc   :  { %1270 = vxpose.xlu0.b32.end [2/2] (short) %v1266_v19, 128 }
 0x458   :  { %v1285_v38 = vpop.trf.xlu0 }
 0x459   :  { %1302 = vst.msk [vmem:[%s2477_s7] sm:$0xff] %vm1301_vm1, %v1285_v38 }
 0x45c   :  { %v1286_v51 = vpop.trf.xlu0 }
 0x45d   :  { %1303 = vst.msk [vmem:[%s2477_s7 + $0x8] sm:$0xff] %vm1301_vm1, %v1286_v51 }
 0x460   :  { %v1287_v54 = vpop.trf.xlu0 }
 0x461   :  { %1304 = vst.msk [vmem:[%s2477_s7 + $0x10] sm:$0xff] %vm1301_vm1, %v1287_v54 }
 0x464   :  { %v1288_v62 = vpop.trf.xlu0 }
 0x465   :  { %1305 = vst.msk [vmem:[%s2477_s7 + $0x18] sm:$0xff] %vm1301_vm1, %v1288_v62 }
 0x468   :  { %v1289_v63 = vpop.trf.xlu0 }
 0x469   :  { %1306 = vst.msk [vmem:[%s2477_s7 + $0x20] sm:$0xff] %vm1301_vm1, %v1289_v63 }
 0x46c   :  { %v1290_v55 = vpop.trf.xlu0 }
 0x46d   :  { %1307 = vst.msk [vmem:[%s2477_s7 + $0x28] sm:$0xff] %vm1301_vm1, %v1290_v55 }
 0x470   :  { %v1291_v61 = vpop.trf.xlu0 }
 0x471   :  { %1308 = vst.msk [vmem:[%s2477_s7 + $0x30] sm:$0xff] %vm1301_vm1, %v1291_v61 }
 0x474   :  { %v1292_v17 = vpop.trf.xlu0 }
 0x475   :  { %1309 = vst.msk [vmem:[%s2477_s7 + $0x38] sm:$0xff] %vm1301_vm1, %v1292_v17 }
 0x478   :  { %v1293_v3 = vpop.trf.xlu0 }
 0x479   :  { %1310 = vst.msk [vmem:[%s2477_s7 + $0x40] sm:$0xff] %vm1301_vm1, %v1293_v3 }
 0x47c   :  { %v1294_v5 = vpop.trf.xlu0 }
 0x47d   :  { %1311 = vst.msk [vmem:[%s2477_s7 + $0x48] sm:$0xff] %vm1301_vm1, %v1294_v5 }
 0x480   :  { %v1295_v18 = vpop.trf.xlu0 }
 0x481   :  { %1312 = vst.msk [vmem:[%s2477_s7 + $0x50] sm:$0xff] %vm1301_vm1, %v1295_v18 }
 0x484   :  { %v1296_v20 = vpop.trf.xlu0 }
 0x485   :  { %1313 = vst.msk [vmem:[%s2477_s7 + $0x58] sm:$0xff] %vm1301_vm1, %v1296_v20 }
 0x488   :  { %v1297_v50 = vpop.trf.xlu0 }
 0x489   :  { %1314 = vst.msk [vmem:[%s2477_s7 + $0x60] sm:$0xff] %vm1301_vm1, %v1297_v50 }
 0x48c   :  { %v1298_v11 = vpop.trf.xlu0 }
 0x48d   :  { %1315 = vst.msk [vmem:[%s2477_s7 + $0x68] sm:$0xff] %vm1301_vm1, %v1298_v11 }
 0x490   :  { %v1299_v10 = vpop.trf.xlu0 }
 0x491   :  { %1316 = vst.msk [vmem:[%s2477_s7 + $0x70] sm:$0xff] %vm1301_vm1, %v1299_v10 }
 0x494   :  { %v1300_v22 = vpop.trf.xlu0 }
 0x495   :  { %1317 = vst.msk [vmem:[%s2477_s7 + $0x78] sm:$0xff] %vm1301_vm1, %v1300_v22 }

</bundles_post_ra>
